<compile_context>
chip_gen: v7x
topology: tpu7x:2x2x1
jax: 0.10.0
libtpu: 0.0.40
codegen_flags: <defaults>
</compile_context>

<pallas_src>
import numpy as np
import jax
import jax.numpy as jnp
from jax.experimental import pallas as pl
from jax.experimental.pallas import tpu as pltpu


# ----------------------------- fused Pallas kernel ------------------------------ #

def _make_fused_losses_kernel(num_layers, eos_coef):
    """Single grid-less kernel computing all losses for all decoder layers.

    Refs (in order):
      logits_0 .. logits_{L-1} : (B, Q, K) per-layer logits (read once each from HBM)
      tcls_ref  : (L, B, Q) int32  target class per query (num_classes == no-object)
      tlen_ref  : (B, 1)    f32    len(labels_b) per batch element
      sbox_ref  : (L, 8, M) f32    matched predicted boxes, rows cx,cy,cz,w,h,d,0,0
      tbox_ref  : (L, 8, M) f32    matched target boxes, same row layout
      valid_ref : (L, 1, M) f32    1.0 for real matches, 0.0 for padded columns
      out_ref   : (L, 8, 128) f32  row 0 lanes: [loss_ce, class_error,
                                   cardinality_error, l1_sum, giou_sum]
    """
    L = int(num_layers)
    eos_coef = float(eos_coef)

    def kernel(*refs):
        logits_refs = refs[:L]
        tcls_ref, tlen_ref, sbox_ref, tbox_ref, valid_ref, out_ref = refs[L:]

        lane = jax.lax.broadcasted_iota(jnp.int32, (1, 128), 1)
        tlen = tlen_ref[...].astype(jnp.float32)                      # (B, 1)

        for l in range(L):                                            # static unroll (L small)
            x = logits_refs[l][...].astype(jnp.float32)               # (B, Q, K)
            B, Q, K = x.shape
            no_obj = K - 1
            tcls = tcls_ref[l]                                        # (B, Q) int32
            matched = tcls != no_obj
            matched_f = matched.astype(jnp.float32)

            # ---- weighted cross-entropy == F.cross_entropy(..., empty_weight, 'mean')
            m = jnp.max(x, axis=-1, keepdims=True)                    # (B, Q, 1)
            z = x - m                                                 # (B, Q, K), z <= 0
            lse = jnp.log(jnp.sum(jnp.exp(z), axis=-1))               # (B, Q)
            kiota = jax.lax.broadcasted_iota(jnp.int32, (B, Q, K), 2)
            z_t = jnp.sum(jnp.where(kiota == tcls[:, :, None], z, 0.0), axis=-1)  # (B, Q)
            nll = lse - z_t
            wts = jnp.where(matched, 1.0, eos_coef)                   # empty_weight[target]
            loss_ce = (jnp.sum(wts * nll, keepdims=True)
                       / jnp.sum(wts, keepdims=True))                 # (1, 1)

            # ---- first-occurrence argmax over classes (z >= 0  <=>  x == row max)
            kiota_f = kiota.astype(jnp.float32)
            first_idx = jnp.min(jnp.where(z >= 0.0, kiota_f, float(K)), axis=-1)  # (B, Q) f32

            # class_error = 100 - top-1 accuracy over matched queries (only used for layer 0,
            # but it is a handful of VPU ops so it is computed unconditionally)
            correct = jnp.where(matched,
                                (first_idx == tcls.astype(jnp.float32)).astype(jnp.float32),
                                0.0)
            n_matched = jnp.sum(matched_f, keepdims=True)             # (1, 1)
            class_err = (100.0 - 100.0 * jnp.sum(correct, keepdims=True)
                         / jnp.maximum(n_matched, 1.0))               # (1, 1)

            # cardinality_error = mean_b | #(argmax != no_object) - len(labels_b) |
            card_pred = jnp.sum((first_idx != float(no_obj)).astype(jnp.float32),
                                axis=-1, keepdims=True)               # (B, 1)
            card_err = jnp.sum(jnp.abs(card_pred - tlen), keepdims=True) / B      # (1, 1)

            # ---- box losses (un-normalized sums; /num_boxes applied outside the kernel)
            s = sbox_ref[l].astype(jnp.float32)                       # (8, M)
            t = tbox_ref[l].astype(jnp.float32)                       # (8, M)
            v = valid_ref[l]                                          # (1, M)
            l1_sum = jnp.sum(jnp.abs(s - t) * v, keepdims=True)       # padded rows/cols -> 0

            s_lo = s[0:3, :] - 0.5 * s[3:6, :]
            s_hi = s[0:3, :] + 0.5 * s[3:6, :]
            t_lo = t[0:3, :] - 0.5 * t[3:6, :]
            t_hi = t[0:3, :] + 0.5 * t[3:6, :]

            def vol3(d):                                              # (3, M) -> (1, M)
                return d[0:1, :] * d[1:2, :] * d[2:3, :]

            va = vol3(s_hi - s_lo)
            vb = vol3(t_hi - t_lo)
            inter = vol3(jnp.maximum(jnp.minimum(s_hi, t_hi) - jnp.maximum(s_lo, t_lo), 0.0))
            union = va + vb - inter
            iou = inter / union                                       # no eps, matches box_ops
            evol = vol3(jnp.maximum(s_hi, t_hi) - jnp.minimum(s_lo, t_lo))
            giou = iou - (evol - union) / evol
            # where-mask (not multiply) so padded/degenerate columns can never inject NaN
            giou_sum = jnp.sum(jnp.where(v > 0.0, 1.0 - giou, 0.0), keepdims=True)  # (1, 1)

            # ---- pack scalars into a lane-dense output row (full, unmasked store)
            row = (jnp.where(lane == 0, loss_ce, 0.0)
                   + jnp.where(lane == 1, class_err, 0.0)
                   + jnp.where(lane == 2, card_err, 0.0)
                   + jnp.where(lane == 3, l1_sum, 0.0)
                   + jnp.where(lane == 4, giou_sum, 0.0))
            out_ref[l, :, :] = jnp.broadcast_to(row, (8, 128))

    return kernel


def _make_criterion_fn(num_layers, eos_coef):
    """Builds the jitted device function: tiny box gathers + one fused pallas_call."""
    L = int(num_layers)
    kernel = _make_fused_losses_kernel(L, eos_coef)

    def fn(logits_layers, boxes_layers, tcls, tlen, src_b, src_q, tbox, valid, num_boxes):
        M = src_b.shape[1]
        # matched predicted boxes: tiny XLA gathers fused inside this jit, coord-major (8, M)
        sboxes = []
        for l in range(L):
            sb = boxes_layers[l][src_b[l], src_q[l]].astype(jnp.float32)          # (M, 6)
            sb = jnp.concatenate([sb.T, jnp.zeros((2, M), jnp.float32)], axis=0)  # (8, M)
            sboxes.append(sb)
        sbox = jnp.stack(sboxes, axis=0)                                          # (L, 8, M)

        out = pl.pallas_call(
            kernel,
            out_shape=jax.ShapeDtypeStruct((L, 8, 128), jnp.float32),
            compiler_params=pltpu.CompilerParams(vmem_limit_bytes=32 * 1024 * 1024),
        )(*logits_layers, tcls, tlen, sbox, tbox, valid)

        scal = out[:, 0, :]                                                       # (L, 128)
        nb = num_boxes[0]
        return {
            "loss_ce": scal[:, 0],
            "class_error": scal[:, 1],
            "cardinality_error": scal[:, 2],
            "loss_bbox": scal[:, 3] / (nb * 4.0),     # reference: l1.sum() / (num_boxes * 4)
            "loss_giou": scal[:, 4] / nb,
        }

    return jax.jit(fn)


# ------------------------------- matcher ----------------------------------- #

def identity_matcher(outputs, targets):
    # TODO(synk): the real Hungarian matcher (scipy linear_sum_assignment over a cost
    # matrix) is a host-side combinatorial solver with no clean Pallas equivalent;
    # a deterministic identity assignment is used here.
    return [(np.arange(len(t["labels"])), np.arange(len(t["labels"]))) for t in targets]


def _next_pow2(n):
    return 1 << max(int(n) - 1, 0).bit_length()


# ----------------------------- SetCriterion -------------------------------- #

class SetCriterion:
    _VALID_LOSSES = ("labels", "cardinality", "boxes", "masks")

    def __init__(self, num_classes, matcher, weight_dict, eos_coef, losses):
        for l in losses:
            assert l in self._VALID_LOSSES, f"do you really want to compute {l} loss?"
        self.num_classes = num_classes
        self.matcher = matcher
        self.weight_dict = weight_dict
        self.eos_coef = eos_coef
        self.losses = losses
        # kept for parity with the PyTorch buffer; the weighting is fused into the kernel
        self.empty_weight = jnp.ones((num_classes + 1,), jnp.float32).at[-1].set(eos_coef)
        self._device_fns = {}    # cache keyed by number of decoder layers

    def _device_fn(self, num_layers):
        fn = self._device_fns.get(num_layers)
        if fn is None:
            fn = _make_criterion_fn(num_layers, self.eos_coef)
            self._device_fns[num_layers] = fn
        return fn

    def forward(self, outputs, targets):
        if "masks" in self.losses:
            # TODO(synk): loss_masks needs NestedTensor padding + trilinear interpolation;
            # no clean Pallas equivalent here.
            raise NotImplementedError("loss_masks is not implemented")

        outputs_without_aux = {k: v for k, v in outputs.items() if k != "aux_outputs"}
        layers = [outputs_without_aux] + list(outputs.get("aux_outputs", []))
        indices_per_layer = [self.matcher(layer, targets) for layer in layers]

        B, Q, _ = layers[0]["pred_logits"].shape
        Lt = len(layers)

        total_targets = int(sum(len(t["labels"]) for t in targets))
        # TODO(synk): distributed training would all-reduce num_boxes across workers here.
        num_boxes = float(max(total_targets, 1))
        # static padded bucket -> changing target counts never retraces/recompiles
        M = max(_next_pow2(max(total_targets, 1)), 8)

        # ---- host-side (numpy) plumbing: one pass, no per-batch device scatters ----
        tcls_np = np.full((Lt, B, Q), self.num_classes, dtype=np.int32)
        tlen_np = np.zeros((B, 1), dtype=np.float32)
        src_b_np = np.zeros((Lt, M), dtype=np.int32)
        src_q_np = np.zeros((Lt, M), dtype=np.int32)
        tbox_np = np.zeros((Lt, 8, M), dtype=np.float32)
        valid_np = np.zeros((Lt, 1, M), dtype=np.float32)
        for b, t in enumerate(targets):
            tlen_np[b, 0] = float(len(t["labels"]))
        for li, inds in enumerate(indices_per_layer):
            off = 0
            for b, (I, J) in enumerate(inds):
                I = np.asarray(I, dtype=np.int64)
                J = np.asarray(J, dtype=np.int64)
                labels_b = np.asarray(targets[b]["labels"]).astype(np.int32)
                boxes_b = (np.asarray(targets[b]["boxes"], dtype=np.float32)
                           if "boxes" in targets[b]
                           else np.zeros((len(labels_b), 6), np.float32))
                n = len(I)
                if n == 0:
                    continue
                tcls_np[li, b, I] = labels_b[J]
                src_b_np[li, off:off + n] = b
                src_q_np[li, off:off + n] = I
                tbox_np[li, 0:6, off:off + n] = boxes_b[J].T
                valid_np[li, 0, off:off + n] = 1.0
                off += n

        # ---- single jitted device program: per-layer logits fed straight to the kernel ----
        res = self._device_fn(Lt)(
            tuple(l["pred_logits"] for l in layers),
            tuple(l["pred_boxes"] for l in layers),
            jnp.asarray(tcls_np),
            jnp.asarray(tlen_np),
            jnp.asarray(src_b_np),
            jnp.asarray(src_q_np),
            jnp.asarray(tbox_np),
            jnp.asarray(valid_np),
            jnp.asarray([num_boxes], jnp.float32),
        )

        # ---- assemble the reference loss dict ----
        losses = {}

        def add_layer(li, suffix, include_class_error):
            if "labels" in self.losses:
                losses["loss_ce" + suffix] = res["loss_ce"][li]
                if include_class_error:
                    losses["class_error" + suffix] = res["class_error"][li]
            if "cardinality" in self.losses:
                losses["cardinality_error" + suffix] = res["cardinality_error"][li]
            if "boxes" in self.losses:
                losses["loss_bbox" + suffix] = res["loss_bbox"][li]
                if "loss_giou" in self.weight_dict:
                    losses["loss_giou" + suffix] = res["loss_giou"][li]

        add_layer(0, "", include_class_error=True)
        for i in range(1, Lt):                       # aux layers: log=False (no class_error)
            add_layer(i, f"_{i - 1}", include_class_error=False)
        return losses


# --------------------------------- demo ------------------------------------ #

if __name__ == "__main__":
    B, Q, num_classes, T = 2, 8, 7, 3
    K = num_classes + 1

    key = jax.random.PRNGKey(0)
    k1, k2, k3, k4, k5, k6 = jax.random.split(key, 6)

    pred_logits = jax.random.normal(k1, (B, Q, K), jnp.float32)
    pred_boxes = jax.nn.sigmoid(jax.random.normal(k2, (B, Q, 6), jnp.float32))
    aux_logits = jax.random.normal(k3, (B, Q, K), jnp.float32)
    aux_boxes = jax.nn.sigmoid(jax.random.normal(k4, (B, Q, 6), jnp.float32))

    tgt_labels = jax.random.randint(k5, (B, T), 0, num_classes, dtype=jnp.int32)
    centers = 0.25 + 0.5 * jax.random.uniform(k6, (B, T, 3), jnp.float32)
    sizes = 0.1 + 0.3 * jax.random.uniform(jax.random.fold_in(k6, 1), (B, T, 3), jnp.float32)
    tgt_boxes = jnp.concatenate([centers, sizes], axis=-1)

    outputs = {
        "pred_logits": pred_logits,
        "pred_boxes": pred_boxes,
        "aux_outputs": [{"pred_logits": aux_logits, "pred_boxes": aux_boxes}],
    }
    targets = [{"labels": tgt_labels[b], "boxes": tgt_boxes[b]} for b in range(B)]

    criterion = SetCriterion(
        num_classes=num_classes,
        matcher=identity_matcher,
        weight_dict={"loss_ce": 1.0, "loss_bbox": 5.0, "loss_giou": 2.0},
        eos_coef=0.1,
        losses=["labels", "cardinality", "boxes"],
    )

    losses = criterion.forward(outputs, targets)
    for v in losses.values():
        jax.block_until_ready(v)
    print("KERNEL_OK")
</pallas_src>

<mosaic_0001>
module attributes {stable_mosaic.version = 11 : i64} {
  func.func @kernel(%arg0: memref<2x8x8xf32, #tpu.memory_space<vmem>>, %arg1: memref<2x8x8xf32, #tpu.memory_space<vmem>>, %arg2: memref<2x2x8xi32, #tpu.memory_space<vmem>>, %arg3: memref<2x1xf32, #tpu.memory_space<vmem>>, %arg4: memref<2x8x8xf32, #tpu.memory_space<vmem>>, %arg5: memref<2x8x8xf32, #tpu.memory_space<vmem>>, %arg6: memref<2x1x8xf32, #tpu.memory_space<vmem>>, %arg7: memref<2x8x128xf32, #tpu.memory_space<vmem>>) attributes {dimension_semantics = [], scalar_prefetch = 0 : i64, scratch_operands = 0 : i64, tpu.core_type = #tpu.core_type<tc>} {
    %0 = tpu.iota {dimensions = array<i32: 1>} : vector<1x128xi32>
    %c0 = arith.constant 0 : index
    %c0_0 = arith.constant 0 : index
    %1 = vector.load %arg3[%c0, %c0_0] : memref<2x1xf32, #tpu.memory_space<vmem>>, vector<2x1xf32>
    %c0_1 = arith.constant 0 : index
    %c0_2 = arith.constant 0 : index
    %c0_3 = arith.constant 0 : index
    %2 = vector.load %arg0[%c0_1, %c0_2, %c0_3] : memref<2x8x8xf32, #tpu.memory_space<vmem>>, vector<2x8x8xf32>
    %c0_4 = arith.constant 0 : index
    %c0_5 = arith.constant 0 : index
    %c0_6 = arith.constant 0 : index
    %3 = vector.load %arg2[%c0_4, %c0_5, %c0_6] : memref<2x2x8xi32, #tpu.memory_space<vmem>>, vector<1x2x8xi32>
    %4 = vector.shape_cast %3 : vector<1x2x8xi32> to vector<2x8xi32>
    %c7_i32 = arith.constant 7 : i32
    %5 = vector.broadcast %c7_i32 : i32 to vector<2x8xi32>
    %6 = arith.cmpi ne, %4, %5 : vector<2x8xi32>
    %7 = arith.extui %6 : vector<2x8xi1> to vector<2x8xi32>
    %8 = arith.sitofp %7 : vector<2x8xi32> to vector<2x8xf32>
    %cst = arith.constant dense<0xFF800000> : vector<2x8xf32>
    %9 = vector.multi_reduction <maximumf>, %2, %cst [2] : vector<2x8x8xf32> to vector<2x8xf32>
    %10 = vector.shape_cast %9 : vector<2x8xf32> to vector<2x8x1xf32>
    %11 = vector.broadcast %10 : vector<2x8x1xf32> to vector<2x8x8xf32>
    %12 = arith.subf %2, %11 : vector<2x8x8xf32>
    %13 = math.exp %12 : vector<2x8x8xf32>
    %cst_7 = arith.constant dense<0.000000e+00> : vector<2x8xf32>
    %14 = vector.multi_reduction <add>, %13, %cst_7 [2] : vector<2x8x8xf32> to vector<2x8xf32>
    %15 = math.log %14 : vector<2x8xf32>
    %16 = tpu.iota {dimensions = array<i32: 2>} : vector<2x8x8xi32>
    %17 = vector.shape_cast %4 : vector<2x8xi32> to vector<2x8x1xi32>
    %18 = vector.broadcast %17 : vector<2x8x1xi32> to vector<2x8x8xi32>
    %19 = arith.cmpi eq, %16, %18 : vector<2x8x8xi32>
    %cst_8 = arith.constant 0.000000e+00 : f32
    %20 = vector.broadcast %cst_8 : f32 to vector<2x8x8xf32>
    %21 = arith.select %19, %12, %20 : vector<2x8x8xi1>, vector<2x8x8xf32>
    %cst_9 = arith.constant dense<0.000000e+00> : vector<2x8xf32>
    %22 = vector.multi_reduction <add>, %21, %cst_9 [2] : vector<2x8x8xf32> to vector<2x8xf32>
    %23 = arith.subf %15, %22 : vector<2x8xf32>
    %cst_10 = arith.constant 1.000000e+00 : f32
    %cst_11 = arith.constant 1.000000e-01 : f32
    %24 = vector.broadcast %cst_10 : f32 to vector<2x8xf32>
    %25 = vector.broadcast %cst_11 : f32 to vector<2x8xf32>
    %26 = arith.select %6, %24, %25 : vector<2x8xi1>, vector<2x8xf32>
    %27 = arith.mulf %26, %23 : vector<2x8xf32>
    %28 = vector.shape_cast %27 : vector<2x8xf32> to vector<1x2x8xf32>
    %cst_12 = arith.constant dense<0.000000e+00> : vector<1xf32>
    %29 = vector.multi_reduction <add>, %28, %cst_12 [1, 2] : vector<1x2x8xf32> to vector<1xf32>
    %30 = vector.shape_cast %29 : vector<1xf32> to vector<1x1x1xf32>
    %31 = vector.extract %30[0, 0, 0] : f32 from vector<1x1x1xf32>
    %32 = vector.broadcast %31 : f32 to vector<1x1xf32>
    %33 = vector.shape_cast %26 : vector<2x8xf32> to vector<1x2x8xf32>
    %cst_13 = arith.constant dense<0.000000e+00> : vector<1xf32>
    %34 = vector.multi_reduction <add>, %33, %cst_13 [1, 2] : vector<1x2x8xf32> to vector<1xf32>
    %35 = vector.shape_cast %34 : vector<1xf32> to vector<1x1x1xf32>
    %36 = vector.extract %35[0, 0, 0] : f32 from vector<1x1x1xf32>
    %37 = vector.broadcast %36 : f32 to vector<1x1xf32>
    %38 = arith.divf %32, %37 : vector<1x1xf32>
    %39 = arith.sitofp %16 : vector<2x8x8xi32> to vector<2x8x8xf32>
    %cst_14 = arith.constant 0.000000e+00 : f32
    %40 = vector.broadcast %cst_14 : f32 to vector<2x8x8xf32>
    %41 = arith.cmpf oge, %12, %40 : vector<2x8x8xf32>
    %cst_15 = arith.constant 8.000000e+00 : f32
    %42 = vector.broadcast %cst_15 : f32 to vector<2x8x8xf32>
    %43 = arith.select %41, %39, %42 : vector<2x8x8xi1>, vector<2x8x8xf32>
    %cst_16 = arith.constant dense<0x7F800000> : vector<2x8xf32>
    %44 = vector.multi_reduction <minimumf>, %43, %cst_16 [2] : vector<2x8x8xf32> to vector<2x8xf32>
    %45 = arith.sitofp %4 : vector<2x8xi32> to vector<2x8xf32>
    %46 = arith.cmpf oeq, %44, %45 : vector<2x8xf32>
    %47 = arith.extui %46 : vector<2x8xi1> to vector<2x8xi32>
    %48 = arith.sitofp %47 : vector<2x8xi32> to vector<2x8xf32>
    %cst_17 = arith.constant 0.000000e+00 : f32
    %49 = vector.broadcast %cst_17 : f32 to vector<2x8xf32>
    %50 = arith.select %6, %48, %49 : vector<2x8xi1>, vector<2x8xf32>
    %51 = vector.shape_cast %8 : vector<2x8xf32> to vector<1x2x8xf32>
    %cst_18 = arith.constant dense<0.000000e+00> : vector<1xf32>
    %52 = vector.multi_reduction <add>, %51, %cst_18 [1, 2] : vector<1x2x8xf32> to vector<1xf32>
    %53 = vector.shape_cast %52 : vector<1xf32> to vector<1x1x1xf32>
    %54 = vector.extract %53[0, 0, 0] : f32 from vector<1x1x1xf32>
    %55 = vector.broadcast %54 : f32 to vector<1x1xf32>
    %56 = vector.shape_cast %50 : vector<2x8xf32> to vector<1x2x8xf32>
    %cst_19 = arith.constant dense<0.000000e+00> : vector<1xf32>
    %57 = vector.multi_reduction <add>, %56, %cst_19 [1, 2] : vector<1x2x8xf32> to vector<1xf32>
    %58 = vector.shape_cast %57 : vector<1xf32> to vector<1x1x1xf32>
    %59 = vector.extract %58[0, 0, 0] : f32 from vector<1x1x1xf32>
    %60 = vector.broadcast %59 : f32 to vector<1x1xf32>
    %cst_20 = arith.constant 1.000000e+02 : f32
    %61 = vector.broadcast %cst_20 : f32 to vector<1x1xf32>
    %62 = arith.mulf %61, %60 : vector<1x1xf32>
    %cst_21 = arith.constant 1.000000e+00 : f32
    %63 = vector.broadcast %cst_21 : f32 to vector<1x1xf32>
    %64 = arith.maximumf %55, %63 : vector<1x1xf32>
    %65 = arith.divf %62, %64 : vector<1x1xf32>
    %cst_22 = arith.constant 1.000000e+02 : f32
    %66 = vector.broadcast %cst_22 : f32 to vector<1x1xf32>
    %67 = arith.subf %66, %65 : vector<1x1xf32>
    %cst_23 = arith.constant 7.000000e+00 : f32
    %68 = vector.broadcast %cst_23 : f32 to vector<2x8xf32>
    %69 = arith.cmpf one, %44, %68 : vector<2x8xf32>
    %70 = arith.extui %69 : vector<2x8xi1> to vector<2x8xi32>
    %71 = arith.sitofp %70 : vector<2x8xi32> to vector<2x8xf32>
    %cst_24 = arith.constant dense<0.000000e+00> : vector<2xf32>
    %72 = vector.multi_reduction <add>, %71, %cst_24 [1] : vector<2x8xf32> to vector<2xf32>
    %73 = vector.shape_cast %72 : vector<2xf32> to vector<2x1xf32>
    %74 = arith.subf %73, %1 : vector<2x1xf32>
    %75 = math.absf %74 : vector<2x1xf32>
    %76 = vector.shape_cast %75 : vector<2x1xf32> to vector<1x2x1xf32>
    %cst_25 = arith.constant dense<0.000000e+00> : vector<1xf32>
    %77 = vector.multi_reduction <add>, %76, %cst_25 [1, 2] : vector<1x2x1xf32> to vector<1xf32>
    %78 = vector.shape_cast %77 : vector<1xf32> to vector<1x1x1xf32>
    %79 = vector.extract %78[0, 0, 0] : f32 from vector<1x1x1xf32>
    %80 = vector.broadcast %79 : f32 to vector<1x1xf32>
    %cst_26 = arith.constant 2.000000e+00 : f32
    %81 = vector.broadcast %cst_26 : f32 to vector<1x1xf32>
    %82 = arith.divf %80, %81 : vector<1x1xf32>
    %c0_27 = arith.constant 0 : index
    %c0_28 = arith.constant 0 : index
    %c0_29 = arith.constant 0 : index
    %83 = vector.load %arg4[%c0_27, %c0_28, %c0_29] : memref<2x8x8xf32, #tpu.memory_space<vmem>>, vector<1x8x8xf32>
    %84 = vector.shape_cast %83 : vector<1x8x8xf32> to vector<8x8xf32>
    %c0_30 = arith.constant 0 : index
    %c0_31 = arith.constant 0 : index
    %c0_32 = arith.constant 0 : index
    %85 = vector.load %arg5[%c0_30, %c0_31, %c0_32] : memref<2x8x8xf32, #tpu.memory_space<vmem>>, vector<1x8x8xf32>
    %86 = vector.shape_cast %85 : vector<1x8x8xf32> to vector<8x8xf32>
    %c0_33 = arith.constant 0 : index
    %c0_34 = arith.constant 0 : index
    %c0_35 = arith.constant 0 : index
    %87 = vector.load %arg6[%c0_33, %c0_34, %c0_35] : memref<2x1x8xf32, #tpu.memory_space<vmem>>, vector<1x1x8xf32>
    %88 = vector.shape_cast %87 : vector<1x1x8xf32> to vector<1x8xf32>
    %89 = arith.subf %84, %86 : vector<8x8xf32>
    %90 = math.absf %89 : vector<8x8xf32>
    %91 = vector.broadcast %88 : vector<1x8xf32> to vector<8x8xf32>
    %92 = arith.mulf %90, %91 : vector<8x8xf32>
    %93 = vector.shape_cast %92 : vector<8x8xf32> to vector<1x8x8xf32>
    %cst_36 = arith.constant dense<0.000000e+00> : vector<1xf32>
    %94 = vector.multi_reduction <add>, %93, %cst_36 [1, 2] : vector<1x8x8xf32> to vector<1xf32>
    %95 = vector.shape_cast %94 : vector<1xf32> to vector<1x1x1xf32>
    %96 = vector.extract %95[0, 0, 0] : f32 from vector<1x1x1xf32>
    %97 = vector.broadcast %96 : f32 to vector<1x1xf32>
    %98 = vector.extract_strided_slice %84 {offsets = [0, 0], sizes = [3, 8], strides = [1, 1]} : vector<8x8xf32> to vector<3x8xf32>
    %99 = vector.extract_strided_slice %84 {offsets = [3, 0], sizes = [3, 8], strides = [1, 1]} : vector<8x8xf32> to vector<3x8xf32>
    %cst_37 = arith.constant 5.000000e-01 : f32
    %100 = vector.broadcast %cst_37 : f32 to vector<3x8xf32>
    %101 = arith.mulf %100, %99 : vector<3x8xf32>
    %102 = arith.subf %98, %101 : vector<3x8xf32>
    %103 = vector.extract_strided_slice %84 {offsets = [0, 0], sizes = [3, 8], strides = [1, 1]} : vector<8x8xf32> to vector<3x8xf32>
    %104 = vector.extract_strided_slice %84 {offsets = [3, 0], sizes = [3, 8], strides = [1, 1]} : vector<8x8xf32> to vector<3x8xf32>
    %cst_38 = arith.constant 5.000000e-01 : f32
    %105 = vector.broadcast %cst_38 : f32 to vector<3x8xf32>
    %106 = arith.mulf %105, %104 : vector<3x8xf32>
    %107 = arith.addf %103, %106 : vector<3x8xf32>
    %108 = vector.extract_strided_slice %86 {offsets = [0, 0], sizes = [3, 8], strides = [1, 1]} : vector<8x8xf32> to vector<3x8xf32>
    %109 = vector.extract_strided_slice %86 {offsets = [3, 0], sizes = [3, 8], strides = [1, 1]} : vector<8x8xf32> to vector<3x8xf32>
    %cst_39 = arith.constant 5.000000e-01 : f32
    %110 = vector.broadcast %cst_39 : f32 to vector<3x8xf32>
    %111 = arith.mulf %110, %109 : vector<3x8xf32>
    %112 = arith.subf %108, %111 : vector<3x8xf32>
    %113 = vector.extract_strided_slice %86 {offsets = [0, 0], sizes = [3, 8], strides = [1, 1]} : vector<8x8xf32> to vector<3x8xf32>
    %114 = vector.extract_strided_slice %86 {offsets = [3, 0], sizes = [3, 8], strides = [1, 1]} : vector<8x8xf32> to vector<3x8xf32>
    %cst_40 = arith.constant 5.000000e-01 : f32
    %115 = vector.broadcast %cst_40 : f32 to vector<3x8xf32>
    %116 = arith.mulf %115, %114 : vector<3x8xf32>
    %117 = arith.addf %113, %116 : vector<3x8xf32>
    %118 = arith.subf %107, %102 : vector<3x8xf32>
    %119 = vector.extract_strided_slice %118 {offsets = [0, 0], sizes = [1, 8], strides = [1, 1]} : vector<3x8xf32> to vector<1x8xf32>
    %120 = vector.extract_strided_slice %118 {offsets = [1, 0], sizes = [1, 8], strides = [1, 1]} : vector<3x8xf32> to vector<1x8xf32>
    %121 = arith.mulf %119, %120 : vector<1x8xf32>
    %122 = vector.extract_strided_slice %118 {offsets = [2, 0], sizes = [1, 8], strides = [1, 1]} : vector<3x8xf32> to vector<1x8xf32>
    %123 = arith.mulf %121, %122 : vector<1x8xf32>
    %124 = arith.subf %117, %112 : vector<3x8xf32>
    %125 = vector.extract_strided_slice %124 {offsets = [0, 0], sizes = [1, 8], strides = [1, 1]} : vector<3x8xf32> to vector<1x8xf32>
    %126 = vector.extract_strided_slice %124 {offsets = [1, 0], sizes = [1, 8], strides = [1, 1]} : vector<3x8xf32> to vector<1x8xf32>
    %127 = arith.mulf %125, %126 : vector<1x8xf32>
    %128 = vector.extract_strided_slice %124 {offsets = [2, 0], sizes = [1, 8], strides = [1, 1]} : vector<3x8xf32> to vector<1x8xf32>
    %129 = arith.mulf %127, %128 : vector<1x8xf32>
    %130 = arith.minimumf %107, %117 : vector<3x8xf32>
    %131 = arith.maximumf %102, %112 : vector<3x8xf32>
    %132 = arith.subf %130, %131 : vector<3x8xf32>
    %cst_41 = arith.constant 0.000000e+00 : f32
    %133 = vector.broadcast %cst_41 : f32 to vector<3x8xf32>
    %134 = arith.maximumf %132, %133 : vector<3x8xf32>
    %135 = vector.extract_strided_slice %134 {offsets = [0, 0], sizes = [1, 8], strides = [1, 1]} : vector<3x8xf32> to vector<1x8xf32>
    %136 = vector.extract_strided_slice %134 {offsets = [1, 0], sizes = [1, 8], strides = [1, 1]} : vector<3x8xf32> to vector<1x8xf32>
    %137 = arith.mulf %135, %136 : vector<1x8xf32>
    %138 = vector.extract_strided_slice %134 {offsets = [2, 0], sizes = [1, 8], strides = [1, 1]} : vector<3x8xf32> to vector<1x8xf32>
    %139 = arith.mulf %137, %138 : vector<1x8xf32>
    %140 = arith.addf %123, %129 : vector<1x8xf32>
    %141 = arith.subf %140, %139 : vector<1x8xf32>
    %142 = arith.divf %139, %141 : vector<1x8xf32>
    %143 = arith.maximumf %107, %117 : vector<3x8xf32>
    %144 = arith.minimumf %102, %112 : vector<3x8xf32>
    %145 = arith.subf %143, %144 : vector<3x8xf32>
    %146 = vector.extract_strided_slice %145 {offsets = [0, 0], sizes = [1, 8], strides = [1, 1]} : vector<3x8xf32> to vector<1x8xf32>
    %147 = vector.extract_strided_slice %145 {offsets = [1, 0], sizes = [1, 8], strides = [1, 1]} : vector<3x8xf32> to vector<1x8xf32>
    %148 = arith.mulf %146, %147 : vector<1x8xf32>
    %149 = vector.extract_strided_slice %145 {offsets = [2, 0], sizes = [1, 8], strides = [1, 1]} : vector<3x8xf32> to vector<1x8xf32>
    %150 = arith.mulf %148, %149 : vector<1x8xf32>
    %151 = arith.subf %150, %141 : vector<1x8xf32>
    %152 = arith.divf %151, %150 : vector<1x8xf32>
    %153 = arith.subf %142, %152 : vector<1x8xf32>
    %cst_42 = arith.constant 0.000000e+00 : f32
    %154 = vector.broadcast %cst_42 : f32 to vector<1x8xf32>
    %155 = arith.cmpf ogt, %88, %154 : vector<1x8xf32>
    %cst_43 = arith.constant 1.000000e+00 : f32
    %156 = vector.broadcast %cst_43 : f32 to vector<1x8xf32>
    %157 = arith.subf %156, %153 : vector<1x8xf32>
    %cst_44 = arith.constant 0.000000e+00 : f32
    %158 = vector.broadcast %cst_44 : f32 to vector<1x8xf32>
    %159 = arith.select %155, %157, %158 : vector<1x8xi1>, vector<1x8xf32>
    %160 = vector.shape_cast %159 : vector<1x8xf32> to vector<1x1x8xf32>
    %cst_45 = arith.constant dense<0.000000e+00> : vector<1xf32>
    %161 = vector.multi_reduction <add>, %160, %cst_45 [1, 2] : vector<1x1x8xf32> to vector<1xf32>
    %162 = vector.shape_cast %161 : vector<1xf32> to vector<1x1x1xf32>
    %163 = vector.extract %162[0, 0, 0] : f32 from vector<1x1x1xf32>
    %164 = vector.broadcast %163 : f32 to vector<1x1xf32>
    %c0_i32 = arith.constant 0 : i32
    %165 = vector.broadcast %c0_i32 : i32 to vector<1x128xi32>
    %166 = arith.cmpi eq, %0, %165 : vector<1x128xi32>
    %cst_46 = arith.constant 0.000000e+00 : f32
    %167 = vector.shape_cast %38 : vector<1x1xf32> to vector<1x1xf32>
    %168 = vector.broadcast %167 : vector<1x1xf32> to vector<1x128xf32>
    %169 = vector.broadcast %cst_46 : f32 to vector<1x128xf32>
    %170 = arith.select %166, %168, %169 : vector<1x128xi1>, vector<1x128xf32>
    %c1_i32 = arith.constant 1 : i32
    %171 = vector.broadcast %c1_i32 : i32 to vector<1x128xi32>
    %172 = arith.cmpi eq, %0, %171 : vector<1x128xi32>
    %cst_47 = arith.constant 0.000000e+00 : f32
    %173 = vector.shape_cast %67 : vector<1x1xf32> to vector<1x1xf32>
    %174 = vector.broadcast %173 : vector<1x1xf32> to vector<1x128xf32>
    %175 = vector.broadcast %cst_47 : f32 to vector<1x128xf32>
    %176 = arith.select %172, %174, %175 : vector<1x128xi1>, vector<1x128xf32>
    %177 = arith.addf %170, %176 : vector<1x128xf32>
    %c2_i32 = arith.constant 2 : i32
    %178 = vector.broadcast %c2_i32 : i32 to vector<1x128xi32>
    %179 = arith.cmpi eq, %0, %178 : vector<1x128xi32>
    %cst_48 = arith.constant 0.000000e+00 : f32
    %180 = vector.shape_cast %82 : vector<1x1xf32> to vector<1x1xf32>
    %181 = vector.broadcast %180 : vector<1x1xf32> to vector<1x128xf32>
    %182 = vector.broadcast %cst_48 : f32 to vector<1x128xf32>
    %183 = arith.select %179, %181, %182 : vector<1x128xi1>, vector<1x128xf32>
    %184 = arith.addf %177, %183 : vector<1x128xf32>
    %c3_i32 = arith.constant 3 : i32
    %185 = vector.broadcast %c3_i32 : i32 to vector<1x128xi32>
    %186 = arith.cmpi eq, %0, %185 : vector<1x128xi32>
    %cst_49 = arith.constant 0.000000e+00 : f32
    %187 = vector.shape_cast %97 : vector<1x1xf32> to vector<1x1xf32>
    %188 = vector.broadcast %187 : vector<1x1xf32> to vector<1x128xf32>
    %189 = vector.broadcast %cst_49 : f32 to vector<1x128xf32>
    %190 = arith.select %186, %188, %189 : vector<1x128xi1>, vector<1x128xf32>
    %191 = arith.addf %184, %190 : vector<1x128xf32>
    %c4_i32 = arith.constant 4 : i32
    %192 = vector.broadcast %c4_i32 : i32 to vector<1x128xi32>
    %193 = arith.cmpi eq, %0, %192 : vector<1x128xi32>
    %cst_50 = arith.constant 0.000000e+00 : f32
    %194 = vector.shape_cast %164 : vector<1x1xf32> to vector<1x1xf32>
    %195 = vector.broadcast %194 : vector<1x1xf32> to vector<1x128xf32>
    %196 = vector.broadcast %cst_50 : f32 to vector<1x128xf32>
    %197 = arith.select %193, %195, %196 : vector<1x128xi1>, vector<1x128xf32>
    %198 = arith.addf %191, %197 : vector<1x128xf32>
    %199 = vector.shape_cast %198 : vector<1x128xf32> to vector<1x128xf32>
    %200 = vector.broadcast %199 : vector<1x128xf32> to vector<8x128xf32>
    %c0_51 = arith.constant 0 : index
    %c0_52 = arith.constant 0 : index
    %c0_53 = arith.constant 0 : index
    %201 = vector.load %arg7[%c0_51, %c0_52, %c0_53] : memref<2x8x128xf32, #tpu.memory_space<vmem>>, vector<1x8x128xf32>
    %202 = vector.shape_cast %201 : vector<1x8x128xf32> to vector<8x128xf32>
    %203 = vector.shape_cast %200 : vector<8x128xf32> to vector<1x8x128xf32>
    tpu.vector_store %arg7[%c0_51, %c0_52, %c0_53], %203 {strides = array<i32>} : memref<2x8x128xf32, #tpu.memory_space<vmem>>, vector<1x8x128xf32>,
    %c0_54 = arith.constant 0 : index
    %c0_55 = arith.constant 0 : index
    %c0_56 = arith.constant 0 : index
    %204 = vector.load %arg1[%c0_54, %c0_55, %c0_56] : memref<2x8x8xf32, #tpu.memory_space<vmem>>, vector<2x8x8xf32>
    %c1 = arith.constant 1 : index
    %c0_57 = arith.constant 0 : index
    %c0_58 = arith.constant 0 : index
    %205 = vector.load %arg2[%c1, %c0_57, %c0_58] : memref<2x2x8xi32, #tpu.memory_space<vmem>>, vector<1x2x8xi32>
    %206 = vector.shape_cast %205 : vector<1x2x8xi32> to vector<2x8xi32>
    %c7_i32_59 = arith.constant 7 : i32
    %207 = vector.broadcast %c7_i32_59 : i32 to vector<2x8xi32>
    %208 = arith.cmpi ne, %206, %207 : vector<2x8xi32>
    %209 = arith.extui %208 : vector<2x8xi1> to vector<2x8xi32>
    %210 = arith.sitofp %209 : vector<2x8xi32> to vector<2x8xf32>
    %cst_60 = arith.constant dense<0xFF800000> : vector<2x8xf32>
    %211 = vector.multi_reduction <maximumf>, %204, %cst_60 [2] : vector<2x8x8xf32> to vector<2x8xf32>
    %212 = vector.shape_cast %211 : vector<2x8xf32> to vector<2x8x1xf32>
    %213 = vector.broadcast %212 : vector<2x8x1xf32> to vector<2x8x8xf32>
    %214 = arith.subf %204, %213 : vector<2x8x8xf32>
    %215 = math.exp %214 : vector<2x8x8xf32>
    %cst_61 = arith.constant dense<0.000000e+00> : vector<2x8xf32>
    %216 = vector.multi_reduction <add>, %215, %cst_61 [2] : vector<2x8x8xf32> to vector<2x8xf32>
    %217 = math.log %216 : vector<2x8xf32>
    %218 = tpu.iota {dimensions = array<i32: 2>} : vector<2x8x8xi32>
    %219 = vector.shape_cast %206 : vector<2x8xi32> to vector<2x8x1xi32>
    %220 = vector.broadcast %219 : vector<2x8x1xi32> to vector<2x8x8xi32>
    %221 = arith.cmpi eq, %218, %220 : vector<2x8x8xi32>
    %cst_62 = arith.constant 0.000000e+00 : f32
    %222 = vector.broadcast %cst_62 : f32 to vector<2x8x8xf32>
    %223 = arith.select %221, %214, %222 : vector<2x8x8xi1>, vector<2x8x8xf32>
    %cst_63 = arith.constant dense<0.000000e+00> : vector<2x8xf32>
    %224 = vector.multi_reduction <add>, %223, %cst_63 [2] : vector<2x8x8xf32> to vector<2x8xf32>
    %225 = arith.subf %217, %224 : vector<2x8xf32>
    %cst_64 = arith.constant 1.000000e+00 : f32
    %cst_65 = arith.constant 1.000000e-01 : f32
    %226 = vector.broadcast %cst_64 : f32 to vector<2x8xf32>
    %227 = vector.broadcast %cst_65 : f32 to vector<2x8xf32>
    %228 = arith.select %208, %226, %227 : vector<2x8xi1>, vector<2x8xf32>
    %229 = arith.mulf %228, %225 : vector<2x8xf32>
    %230 = vector.shape_cast %229 : vector<2x8xf32> to vector<1x2x8xf32>
    %cst_66 = arith.constant dense<0.000000e+00> : vector<1xf32>
    %231 = vector.multi_reduction <add>, %230, %cst_66 [1, 2] : vector<1x2x8xf32> to vector<1xf32>
    %232 = vector.shape_cast %231 : vector<1xf32> to vector<1x1x1xf32>
    %233 = vector.extract %232[0, 0, 0] : f32 from vector<1x1x1xf32>
    %234 = vector.broadcast %233 : f32 to vector<1x1xf32>
    %235 = vector.shape_cast %228 : vector<2x8xf32> to vector<1x2x8xf32>
    %cst_67 = arith.constant dense<0.000000e+00> : vector<1xf32>
    %236 = vector.multi_reduction <add>, %235, %cst_67 [1, 2] : vector<1x2x8xf32> to vector<1xf32>
    %237 = vector.shape_cast %236 : vector<1xf32> to vector<1x1x1xf32>
    %238 = vector.extract %237[0, 0, 0] : f32 from vector<1x1x1xf32>
    %239 = vector.broadcast %238 : f32 to vector<1x1xf32>
    %240 = arith.divf %234, %239 : vector<1x1xf32>
    %241 = arith.sitofp %218 : vector<2x8x8xi32> to vector<2x8x8xf32>
    %cst_68 = arith.constant 0.000000e+00 : f32
    %242 = vector.broadcast %cst_68 : f32 to vector<2x8x8xf32>
    %243 = arith.cmpf oge, %214, %242 : vector<2x8x8xf32>
    %cst_69 = arith.constant 8.000000e+00 : f32
    %244 = vector.broadcast %cst_69 : f32 to vector<2x8x8xf32>
    %245 = arith.select %243, %241, %244 : vector<2x8x8xi1>, vector<2x8x8xf32>
    %cst_70 = arith.constant dense<0x7F800000> : vector<2x8xf32>
    %246 = vector.multi_reduction <minimumf>, %245, %cst_70 [2] : vector<2x8x8xf32> to vector<2x8xf32>
    %247 = arith.sitofp %206 : vector<2x8xi32> to vector<2x8xf32>
    %248 = arith.cmpf oeq, %246, %247 : vector<2x8xf32>
    %249 = arith.extui %248 : vector<2x8xi1> to vector<2x8xi32>
    %250 = arith.sitofp %249 : vector<2x8xi32> to vector<2x8xf32>
    %cst_71 = arith.constant 0.000000e+00 : f32
    %251 = vector.broadcast %cst_71 : f32 to vector<2x8xf32>
    %252 = arith.select %208, %250, %251 : vector<2x8xi1>, vector<2x8xf32>
    %253 = vector.shape_cast %210 : vector<2x8xf32> to vector<1x2x8xf32>
    %cst_72 = arith.constant dense<0.000000e+00> : vector<1xf32>
    %254 = vector.multi_reduction <add>, %253, %cst_72 [1, 2] : vector<1x2x8xf32> to vector<1xf32>
    %255 = vector.shape_cast %254 : vector<1xf32> to vector<1x1x1xf32>
    %256 = vector.extract %255[0, 0, 0] : f32 from vector<1x1x1xf32>
    %257 = vector.broadcast %256 : f32 to vector<1x1xf32>
    %258 = vector.shape_cast %252 : vector<2x8xf32> to vector<1x2x8xf32>
    %cst_73 = arith.constant dense<0.000000e+00> : vector<1xf32>
    %259 = vector.multi_reduction <add>, %258, %cst_73 [1, 2] : vector<1x2x8xf32> to vector<1xf32>
    %260 = vector.shape_cast %259 : vector<1xf32> to vector<1x1x1xf32>
    %261 = vector.extract %260[0, 0, 0] : f32 from vector<1x1x1xf32>
    %262 = vector.broadcast %261 : f32 to vector<1x1xf32>
    %cst_74 = arith.constant 1.000000e+02 : f32
    %263 = vector.broadcast %cst_74 : f32 to vector<1x1xf32>
    %264 = arith.mulf %263, %262 : vector<1x1xf32>
    %cst_75 = arith.constant 1.000000e+00 : f32
    %265 = vector.broadcast %cst_75 : f32 to vector<1x1xf32>
    %266 = arith.maximumf %257, %265 : vector<1x1xf32>
    %267 = arith.divf %264, %266 : vector<1x1xf32>
    %cst_76 = arith.constant 1.000000e+02 : f32
    %268 = vector.broadcast %cst_76 : f32 to vector<1x1xf32>
    %269 = arith.subf %268, %267 : vector<1x1xf32>
    %cst_77 = arith.constant 7.000000e+00 : f32
    %270 = vector.broadcast %cst_77 : f32 to vector<2x8xf32>
    %271 = arith.cmpf one, %246, %270 : vector<2x8xf32>
    %272 = arith.extui %271 : vector<2x8xi1> to vector<2x8xi32>
    %273 = arith.sitofp %272 : vector<2x8xi32> to vector<2x8xf32>
    %cst_78 = arith.constant dense<0.000000e+00> : vector<2xf32>
    %274 = vector.multi_reduction <add>, %273, %cst_78 [1] : vector<2x8xf32> to vector<2xf32>
    %275 = vector.shape_cast %274 : vector<2xf32> to vector<2x1xf32>
    %276 = arith.subf %275, %1 : vector<2x1xf32>
    %277 = math.absf %276 : vector<2x1xf32>
    %278 = vector.shape_cast %277 : vector<2x1xf32> to vector<1x2x1xf32>
    %cst_79 = arith.constant dense<0.000000e+00> : vector<1xf32>
    %279 = vector.multi_reduction <add>, %278, %cst_79 [1, 2] : vector<1x2x1xf32> to vector<1xf32>
    %280 = vector.shape_cast %279 : vector<1xf32> to vector<1x1x1xf32>
    %281 = vector.extract %280[0, 0, 0] : f32 from vector<1x1x1xf32>
    %282 = vector.broadcast %281 : f32 to vector<1x1xf32>
    %cst_80 = arith.constant 2.000000e+00 : f32
    %283 = vector.broadcast %cst_80 : f32 to vector<1x1xf32>
    %284 = arith.divf %282, %283 : vector<1x1xf32>
    %c1_81 = arith.constant 1 : index
    %c0_82 = arith.constant 0 : index
    %c0_83 = arith.constant 0 : index
    %285 = vector.load %arg4[%c1_81, %c0_82, %c0_83] : memref<2x8x8xf32, #tpu.memory_space<vmem>>, vector<1x8x8xf32>
    %286 = vector.shape_cast %285 : vector<1x8x8xf32> to vector<8x8xf32>
    %c1_84 = arith.constant 1 : index
    %c0_85 = arith.constant 0 : index
    %c0_86 = arith.constant 0 : index
    %287 = vector.load %arg5[%c1_84, %c0_85, %c0_86] : memref<2x8x8xf32, #tpu.memory_space<vmem>>, vector<1x8x8xf32>
    %288 = vector.shape_cast %287 : vector<1x8x8xf32> to vector<8x8xf32>
    %c1_87 = arith.constant 1 : index
    %c0_88 = arith.constant 0 : index
    %c0_89 = arith.constant 0 : index
    %289 = vector.load %arg6[%c1_87, %c0_88, %c0_89] : memref<2x1x8xf32, #tpu.memory_space<vmem>>, vector<1x1x8xf32>
    %290 = vector.shape_cast %289 : vector<1x1x8xf32> to vector<1x8xf32>
    %291 = arith.subf %286, %288 : vector<8x8xf32>
    %292 = math.absf %291 : vector<8x8xf32>
    %293 = vector.broadcast %290 : vector<1x8xf32> to vector<8x8xf32>
    %294 = arith.mulf %292, %293 : vector<8x8xf32>
    %295 = vector.shape_cast %294 : vector<8x8xf32> to vector<1x8x8xf32>
    %cst_90 = arith.constant dense<0.000000e+00> : vector<1xf32>
    %296 = vector.multi_reduction <add>, %295, %cst_90 [1, 2] : vector<1x8x8xf32> to vector<1xf32>
    %297 = vector.shape_cast %296 : vector<1xf32> to vector<1x1x1xf32>
    %298 = vector.extract %297[0, 0, 0] : f32 from vector<1x1x1xf32>
    %299 = vector.broadcast %298 : f32 to vector<1x1xf32>
    %300 = vector.extract_strided_slice %286 {offsets = [0, 0], sizes = [3, 8], strides = [1, 1]} : vector<8x8xf32> to vector<3x8xf32>
    %301 = vector.extract_strided_slice %286 {offsets = [3, 0], sizes = [3, 8], strides = [1, 1]} : vector<8x8xf32> to vector<3x8xf32>
    %cst_91 = arith.constant 5.000000e-01 : f32
    %302 = vector.broadcast %cst_91 : f32 to vector<3x8xf32>
    %303 = arith.mulf %302, %301 : vector<3x8xf32>
    %304 = arith.subf %300, %303 : vector<3x8xf32>
    %305 = vector.extract_strided_slice %286 {offsets = [0, 0], sizes = [3, 8], strides = [1, 1]} : vector<8x8xf32> to vector<3x8xf32>
    %306 = vector.extract_strided_slice %286 {offsets = [3, 0], sizes = [3, 8], strides = [1, 1]} : vector<8x8xf32> to vector<3x8xf32>
    %cst_92 = arith.constant 5.000000e-01 : f32
    %307 = vector.broadcast %cst_92 : f32 to vector<3x8xf32>
    %308 = arith.mulf %307, %306 : vector<3x8xf32>
    %309 = arith.addf %305, %308 : vector<3x8xf32>
    %310 = vector.extract_strided_slice %288 {offsets = [0, 0], sizes = [3, 8], strides = [1, 1]} : vector<8x8xf32> to vector<3x8xf32>
    %311 = vector.extract_strided_slice %288 {offsets = [3, 0], sizes = [3, 8], strides = [1, 1]} : vector<8x8xf32> to vector<3x8xf32>
    %cst_93 = arith.constant 5.000000e-01 : f32
    %312 = vector.broadcast %cst_93 : f32 to vector<3x8xf32>
    %313 = arith.mulf %312, %311 : vector<3x8xf32>
    %314 = arith.subf %310, %313 : vector<3x8xf32>
    %315 = vector.extract_strided_slice %288 {offsets = [0, 0], sizes = [3, 8], strides = [1, 1]} : vector<8x8xf32> to vector<3x8xf32>
    %316 = vector.extract_strided_slice %288 {offsets = [3, 0], sizes = [3, 8], strides = [1, 1]} : vector<8x8xf32> to vector<3x8xf32>
    %cst_94 = arith.constant 5.000000e-01 : f32
    %317 = vector.broadcast %cst_94 : f32 to vector<3x8xf32>
    %318 = arith.mulf %317, %316 : vector<3x8xf32>
    %319 = arith.addf %315, %318 : vector<3x8xf32>
    %320 = arith.subf %309, %304 : vector<3x8xf32>
    %321 = vector.extract_strided_slice %320 {offsets = [0, 0], sizes = [1, 8], strides = [1, 1]} : vector<3x8xf32> to vector<1x8xf32>
    %322 = vector.extract_strided_slice %320 {offsets = [1, 0], sizes = [1, 8], strides = [1, 1]} : vector<3x8xf32> to vector<1x8xf32>
    %323 = arith.mulf %321, %322 : vector<1x8xf32>
    %324 = vector.extract_strided_slice %320 {offsets = [2, 0], sizes = [1, 8], strides = [1, 1]} : vector<3x8xf32> to vector<1x8xf32>
    %325 = arith.mulf %323, %324 : vector<1x8xf32>
    %326 = arith.subf %319, %314 : vector<3x8xf32>
    %327 = vector.extract_strided_slice %326 {offsets = [0, 0], sizes = [1, 8], strides = [1, 1]} : vector<3x8xf32> to vector<1x8xf32>
    %328 = vector.extract_strided_slice %326 {offsets = [1, 0], sizes = [1, 8], strides = [1, 1]} : vector<3x8xf32> to vector<1x8xf32>
    %329 = arith.mulf %327, %328 : vector<1x8xf32>
    %330 = vector.extract_strided_slice %326 {offsets = [2, 0], sizes = [1, 8], strides = [1, 1]} : vector<3x8xf32> to vector<1x8xf32>
    %331 = arith.mulf %329, %330 : vector<1x8xf32>
    %332 = arith.minimumf %309, %319 : vector<3x8xf32>
    %333 = arith.maximumf %304, %314 : vector<3x8xf32>
    %334 = arith.subf %332, %333 : vector<3x8xf32>
    %cst_95 = arith.constant 0.000000e+00 : f32
    %335 = vector.broadcast %cst_95 : f32 to vector<3x8xf32>
    %336 = arith.maximumf %334, %335 : vector<3x8xf32>
    %337 = vector.extract_strided_slice %336 {offsets = [0, 0], sizes = [1, 8], strides = [1, 1]} : vector<3x8xf32> to vector<1x8xf32>
    %338 = vector.extract_strided_slice %336 {offsets = [1, 0], sizes = [1, 8], strides = [1, 1]} : vector<3x8xf32> to vector<1x8xf32>
    %339 = arith.mulf %337, %338 : vector<1x8xf32>
    %340 = vector.extract_strided_slice %336 {offsets = [2, 0], sizes = [1, 8], strides = [1, 1]} : vector<3x8xf32> to vector<1x8xf32>
    %341 = arith.mulf %339, %340 : vector<1x8xf32>
    %342 = arith.addf %325, %331 : vector<1x8xf32>
    %343 = arith.subf %342, %341 : vector<1x8xf32>
    %344 = arith.divf %341, %343 : vector<1x8xf32>
    %345 = arith.maximumf %309, %319 : vector<3x8xf32>
    %346 = arith.minimumf %304, %314 : vector<3x8xf32>
    %347 = arith.subf %345, %346 : vector<3x8xf32>
    %348 = vector.extract_strided_slice %347 {offsets = [0, 0], sizes = [1, 8], strides = [1, 1]} : vector<3x8xf32> to vector<1x8xf32>
    %349 = vector.extract_strided_slice %347 {offsets = [1, 0], sizes = [1, 8], strides = [1, 1]} : vector<3x8xf32> to vector<1x8xf32>
    %350 = arith.mulf %348, %349 : vector<1x8xf32>
    %351 = vector.extract_strided_slice %347 {offsets = [2, 0], sizes = [1, 8], strides = [1, 1]} : vector<3x8xf32> to vector<1x8xf32>
    %352 = arith.mulf %350, %351 : vector<1x8xf32>
    %353 = arith.subf %352, %343 : vector<1x8xf32>
    %354 = arith.divf %353, %352 : vector<1x8xf32>
    %355 = arith.subf %344, %354 : vector<1x8xf32>
    %cst_96 = arith.constant 0.000000e+00 : f32
    %356 = vector.broadcast %cst_96 : f32 to vector<1x8xf32>
    %357 = arith.cmpf ogt, %290, %356 : vector<1x8xf32>
    %cst_97 = arith.constant 1.000000e+00 : f32
    %358 = vector.broadcast %cst_97 : f32 to vector<1x8xf32>
    %359 = arith.subf %358, %355 : vector<1x8xf32>
    %cst_98 = arith.constant 0.000000e+00 : f32
    %360 = vector.broadcast %cst_98 : f32 to vector<1x8xf32>
    %361 = arith.select %357, %359, %360 : vector<1x8xi1>, vector<1x8xf32>
    %362 = vector.shape_cast %361 : vector<1x8xf32> to vector<1x1x8xf32>
    %cst_99 = arith.constant dense<0.000000e+00> : vector<1xf32>
    %363 = vector.multi_reduction <add>, %362, %cst_99 [1, 2] : vector<1x1x8xf32> to vector<1xf32>
    %364 = vector.shape_cast %363 : vector<1xf32> to vector<1x1x1xf32>
    %365 = vector.extract %364[0, 0, 0] : f32 from vector<1x1x1xf32>
    %366 = vector.broadcast %365 : f32 to vector<1x1xf32>
    %c0_i32_100 = arith.constant 0 : i32
    %367 = vector.broadcast %c0_i32_100 : i32 to vector<1x128xi32>
    %368 = arith.cmpi eq, %0, %367 : vector<1x128xi32>
    %cst_101 = arith.constant 0.000000e+00 : f32
    %369 = vector.shape_cast %240 : vector<1x1xf32> to vector<1x1xf32>
    %370 = vector.broadcast %369 : vector<1x1xf32> to vector<1x128xf32>
    %371 = vector.broadcast %cst_101 : f32 to vector<1x128xf32>
    %372 = arith.select %368, %370, %371 : vector<1x128xi1>, vector<1x128xf32>
    %c1_i32_102 = arith.constant 1 : i32
    %373 = vector.broadcast %c1_i32_102 : i32 to vector<1x128xi32>
    %374 = arith.cmpi eq, %0, %373 : vector<1x128xi32>
    %cst_103 = arith.constant 0.000000e+00 : f32
    %375 = vector.shape_cast %269 : vector<1x1xf32> to vector<1x1xf32>
    %376 = vector.broadcast %375 : vector<1x1xf32> to vector<1x128xf32>
    %377 = vector.broadcast %cst_103 : f32 to vector<1x128xf32>
    %378 = arith.select %374, %376, %377 : vector<1x128xi1>, vector<1x128xf32>
    %379 = arith.addf %372, %378 : vector<1x128xf32>
    %c2_i32_104 = arith.constant 2 : i32
    %380 = vector.broadcast %c2_i32_104 : i32 to vector<1x128xi32>
    %381 = arith.cmpi eq, %0, %380 : vector<1x128xi32>
    %cst_105 = arith.constant 0.000000e+00 : f32
    %382 = vector.shape_cast %284 : vector<1x1xf32> to vector<1x1xf32>
    %383 = vector.broadcast %382 : vector<1x1xf32> to vector<1x128xf32>
    %384 = vector.broadcast %cst_105 : f32 to vector<1x128xf32>
    %385 = arith.select %381, %383, %384 : vector<1x128xi1>, vector<1x128xf32>
    %386 = arith.addf %379, %385 : vector<1x128xf32>
    %c3_i32_106 = arith.constant 3 : i32
    %387 = vector.broadcast %c3_i32_106 : i32 to vector<1x128xi32>
    %388 = arith.cmpi eq, %0, %387 : vector<1x128xi32>
    %cst_107 = arith.constant 0.000000e+00 : f32
    %389 = vector.shape_cast %299 : vector<1x1xf32> to vector<1x1xf32>
    %390 = vector.broadcast %389 : vector<1x1xf32> to vector<1x128xf32>
    %391 = vector.broadcast %cst_107 : f32 to vector<1x128xf32>
    %392 = arith.select %388, %390, %391 : vector<1x128xi1>, vector<1x128xf32>
    %393 = arith.addf %386, %392 : vector<1x128xf32>
    %c4_i32_108 = arith.constant 4 : i32
    %394 = vector.broadcast %c4_i32_108 : i32 to vector<1x128xi32>
    %395 = arith.cmpi eq, %0, %394 : vector<1x128xi32>
    %cst_109 = arith.constant 0.000000e+00 : f32
    %396 = vector.shape_cast %366 : vector<1x1xf32> to vector<1x1xf32>
    %397 = vector.broadcast %396 : vector<1x1xf32> to vector<1x128xf32>
    %398 = vector.broadcast %cst_109 : f32 to vector<1x128xf32>
    %399 = arith.select %395, %397, %398 : vector<1x128xi1>, vector<1x128xf32>
    %400 = arith.addf %393, %399 : vector<1x128xf32>
    %401 = vector.shape_cast %400 : vector<1x128xf32> to vector<1x128xf32>
    %402 = vector.broadcast %401 : vector<1x128xf32> to vector<8x128xf32>
    %c1_110 = arith.constant 1 : index
    %c0_111 = arith.constant 0 : index
    %c0_112 = arith.constant 0 : index
    %403 = vector.load %arg7[%c1_110, %c0_111, %c0_112] : memref<2x8x128xf32, #tpu.memory_space<vmem>>, vector<1x8x128xf32>
    %404 = vector.shape_cast %403 : vector<1x8x128xf32> to vector<8x128xf32>
    %405 = vector.shape_cast %402 : vector<8x128xf32> to vector<1x8x128xf32>
    tpu.vector_store %arg7[%c1_110, %c0_111, %c0_112], %405 {strides = array<i32>} : memref<2x8x128xf32, #tpu.memory_space<vmem>>, vector<1x8x128xf32>,
    return
  }
}

</mosaic_0001>

<bundles_post_ra>
// kernel: fn.1
= control target key start
LH: loop header
LB: loop body
LE: loop exit
PB: predicated region body
PF: predicated region fallthrough
CT: control target
= control target key end

     0   :  { %vm35_vm0 = vcmask 64512   ;;  %v26_v8 = vlaneseq  ;;  %v762_v41 = vmov 0   ;;  %vm95_vm11 = vcmask 1041409   ;;  %s1006_s1 = inlined_call_operand.vmem [shape: f32[2,8,8], index: 1, kind: input, shape index: {}]   ;;  %s1007_s0 = inlined_call_operand.vmem [shape: f32[2,8,8], index: 0, kind: input, shape index: {}]   ;;  %s1008_s2 = inlined_call_operand.vmem [shape: s32[2,2,8], index: 2, kind: input, shape index: {}]   ;;  %s1009_s4 = inlined_call_operand.vmem [shape: f32[2,8,8], index: 4, kind: input, shape index: {}]   ;;  %s1010_s5 = inlined_call_operand.vmem [shape: f32[2,8,8], index: 5, kind: input, shape index: {}]   ;;  %s1011_s6 = inlined_call_operand.vmem [shape: f32[2,1,8], index: 6, kind: input, shape index: {}]   ;;  %s1012_s3 = inlined_call_operand.vmem [shape: f32[2,1], index: 3, kind: input, shape index: {}]   ;;  %s1013_s7 = inlined_call_operand.vmem [shape: f32[2,8,128], index: 7, kind: output, shape index: {}]  }
   0x1   :  { %v352_v0 = vld [vmem:[%s1006_s1] sm:$0xff]  ;;  %v353_v2 = vld [vmem:[%s1006_s1 + $0x8] sm:$0xff]  ;;  %718 = vset.pattern.permute.xlu1 %v762_v41  ;;  %724 = vset.pattern.permute.xlu0 %v762_v41  ;;  %vm99_vm15 = vcmask 58368  }
   0x2   :  { %v29_v1 = vld [vmem:[%s1007_s0] sm:$0xff]  ;;  %v359_v3 = vsel %vm35_vm0, %v352_v0, -inf  ;;  %v30_v5 = vld [vmem:[%s1007_s0 + $0x8] sm:$0xff]  ;;  %v362_v6 = vsel %vm35_vm0, %v353_v2, -inf  ;;  %v821_v9 = vshrl.u32 %v26_v8, 7  ;;  %v845_v21 = vand.u32 127, %v26_v8 }
   0x3   :  { %v36_v4 = vsel %vm35_vm0, %v29_v1, -inf  ;;  %360 = vmax.xlane.f32.xlu1 %v359_v3  ;;  %v39_v7 = vsel %vm35_vm0, %v30_v5, -inf  ;;  %v827_v11 = vld [vmem:[%s1008_s2] sm:$0x3]  ;;  %v836_v14 = vld [vmem:[%s1008_s2 + $0x2] sm:$0x3] }
   0x4   :  { %37 = vmax.xlane.f32.xlu0 %v36_v4  ;;  %v67_v10 = vsub.s32 1, %v821_v9  ;;  %v831_v13 = vsub.s32 0, %v821_v9  ;;  %v135_v17 = vcvt.s32.f32 %v827_v11  ;;  %v124_v24 = vcvt.s32.f32 %v845_v21  ;;  %v869_v3 = vld [vmem:[%s1009_s4] sm:$0xff] }
   0x5   :  { %v455_v39 = vcvt.s32.f32 %v836_v14  ;;  %v874_v4 = vld [vmem:[%s1010_s5] sm:$0xff] }
   0x6   :  { %v68_v12 = vrot.slane %v827_v11, %v67_v10  ;;  %v384_v15 = vrot.slane %v836_v14, %v831_v13  ;;  %v61_v16 = vrot.slane %v827_v11, %v831_v13  ;;  %v391_v18 = vrot.slane %v836_v14, %v67_v10 }
   0x7   :  { %363 = vmax.xlane.f32.xlu1 %v362_v6  ;;  %v140_v19 = vrot.slane %v135_v17, %v831_v13  ;;  %v147_v20 = vrot.slane %v135_v17, %v67_v10  ;;  %v467_v40 = vrot.slane %v455_v39, %v67_v10  ;;  %v460_v42 = vrot.slane %v455_v39, %v831_v13 }
   0x8   :  { %40 = vmax.xlane.f32.xlu0 %v39_v7  ;;  %v270_v6 = vmul.f32 0.5, %v874_v4 }
   0xa   :  { %v272_v8 = vrot.slane %v270_v6, 3 }
  0x18   :  { %70 = vbcast.lane.b32.xlu1 %v68_v12, 256 }
  0x1c   :  { %386 = vbcast.lane.b32.xlu1 %v384_v15, 256  ;;  %v274_v15 = vsub.f32 %v874_v4, %v272_v8 }
  0x1e   :  { %63 = vbcast.lane.b32.xlu0 %v61_v16, 256  ;;  %v275_v16 = vadd.f32 %v272_v8, %v874_v4 }
  0x20   :  { %393 = vbcast.lane.b32.xlu1 %v391_v18, 256 }
  0x22   :  { %142 = vbcast.lane.b32.xlu0 %v140_v19, 256 }
  0x24   :  { %149 = vbcast.lane.b32.xlu1 %v147_v20, 256 }
  0x90   :  { %v361_v22 = vpop.xlane.xlu1 %360 }
  0x91   :  { %v38_v23 = vpop.xlane.xlu0 %37  ;;  %v365_v25 = vsub.f32 %v352_v0, %v361_v22  ;;  %v284_v22 = vsub.f32 %v275_v16, %v274_v15 }
  0x92   :  { %v42_v26 = vsub.f32 %v29_v1, %v38_v23 }
  0x93   :  { %vm445_vm2 = vcmp.ge.f32.partialorder %v365_v25, 0.0  ;;  %v367_v47 = vmul.f32 1.442695, %v365_v25  ;;  %v289_v39 = vrot.slane %v284_v22, 2 }
  0x94   :  { %vm125_vm1 = vcmp.ge.f32.partialorder %v42_v26, 0.0  ;;  %v364_v27 = vpop.xlane.xlu1 %363  ;;  %v447_v30 = vsel %vm445_vm2, %v124_v24, 8.0  ;;  %v44_v44 = vmul.f32 1.442695, %v42_v26 }
  0x95   :  { %v41_v28 = vpop.xlane.xlu0 %40  ;;  %v127_v29 = vsel %vm125_vm1, %v124_v24, 8.0  ;;  %v366_v31 = vsub.f32 %v353_v2, %v364_v27  ;;  %v449_v34 = vsel %vm35_vm0, %v447_v30, inf  ;;  %v286_v27 = vrot.slane %v284_v22, 1 }
  0x96   :  { %v43_v32 = vsub.f32 %v30_v5, %v41_v28  ;;  %v129_v33 = vsel %vm35_vm0, %v127_v29, inf  ;;  %730 = vpow2.f32 %v44_v44  ;;  %v264_v5 = vmul.f32 0.5, %v869_v3 }
  0x97   :  { %130 = vmin.xlane.f32.xlu0 %v129_v33  ;;  %vm446_vm4 = vcmp.ge.f32.partialorder %v366_v31, 0.0  ;;  %732 = vpow2.f32 %v367_v47  ;;  %v369_v50 = vmul.f32 1.442695, %v366_v31  ;;  %v763_v33 = vmov 0.0  }
  0x98   :  { %vm126_vm3 = vcmp.ge.f32.partialorder %v43_v32, 0.0  ;;  %v448_v36 = vsel %vm446_vm4, %v124_v24, 8.0  ;;  %v71_v43 = vpop.permute.xlu1 %70  ;;  %v46_v48 = vmul.f32 1.442695, %v43_v32  ;;  %v266_v7 = vrot.slane %v264_v5, 3 }
  0x99   :  { %v128_v35 = vsel %vm126_vm3, %v124_v24, 8.0  ;;  %v452_v38 = vsel %vm35_vm0, %v448_v36, inf  ;;  %v64_v45 = vpop.permute.xlu0 %63  ;;  %vm73_vm6 = vcmp.eq.s32.totalorder %v845_v21, %v71_v43  ;;  %vm32_vm4 = vcmp.ne.s32.totalorder %v827_v11, 7 }
  0x9a   :  { %v132_v37 = vsel %vm35_vm0, %v128_v35, inf  ;;  %vm72_vm5 = vcmp.eq.s32.totalorder %v845_v21, %v64_v45  ;;  %734 = vpow2.f32 %v46_v48  ;;  %v75_v53 = vsel %vm73_vm6, %v43_v32, 0.0 }
  0x9b   :  { %450 = vmin.xlane.f32.xlu0 %v449_v34  ;;  %133 = vmin.xlane.f32.xlu1 %v132_v37  ;;  %v74_v49 = vsel %vm72_vm5, %v42_v26, 0.0  ;;  %736 = vpow2.f32 %v369_v50  ;;  %v79_v55 = vsel %vm35_vm0, %v75_v53, 0.0  ;;  %v268_v10 = vsub.f32 %v869_v3, %v266_v7 }
  0x9c   :  { %v387_v46 = vpop.permute.xlu1 %386  ;;  %v76_v52 = vsel %vm35_vm0, %v74_v49, 0.0  ;;  %v269_v12 = vadd.f32 %v266_v7, %v869_v3  ;;  %vm324_vm6 = vcmask 57344  }
  0x9d   :  { %vm395_vm7 = vcmp.eq.s32.totalorder %v845_v21, %v387_v46  ;;  %v293_v18 = vmax.f32 %v268_v10, %v274_v15  ;;  %v143_v20 = vpop.permute.xlu0 %142  ;;  %v308_v30 = vmin.f32 %v268_v10, %v274_v15 }
  0x9e   :  { %v397_v54 = vsel %vm395_vm7, %v365_v25, 0.0  ;;  %v292_v17 = vmin.f32 %v269_v12, %v275_v16  ;;  %v276_v19 = vsub.f32 %v269_v12, %v268_v10  ;;  %v307_v29 = vmax.f32 %v269_v12, %v275_v16 }
  0x9f   :  { %453 = vmin.xlane.f32.xlu1 %v452_v38  ;;  %v399_v56 = vsel %vm35_vm0, %v397_v54, 0.0  ;;  %v288_v38 = vmul.f32 %v286_v27, %v284_v22  ;;  %v245_v16 = vsub.f32 %v869_v3, %v874_v4  ;;  %vm356_vm7 = vcmp.ne.s32.totalorder %v836_v14, 7 }
  0xa0   :  { %v394_v51 = vpop.permute.xlu1 %393  ;;  %v731_v57 = vpop.eup %730  ;;  %v294_v23 = vsub.f32 %v292_v17, %v293_v18  ;;  %v278_v24 = vrot.slane %v276_v19, 1  ;;  %v281_v37 = vrot.slane %v276_v19, 2  ;;  %v309_v43 = vsub.f32 %v307_v29, %v308_v30  ;;  %v244_v18 = vld [vmem:[%s1011_s6] sm:$0x1] }
  0xa1   :  { %vm396_vm8 = vcmp.eq.s32.totalorder %v845_v21, %v394_v51  ;;  %v733_v59 = vpop.eup %732  ;;  %v48_v61 = vsel %vm35_vm0, %v731_v57, 0.0  ;;  %v291_v50 = vmul.f32 %v289_v39, %v288_v38  ;;  %v246_v22 = vand.u32 2147483647, %v245_v16 }
  0xa2   :  { %v398_v58 = vsel %vm396_vm8, %v366_v31, 0.0  ;;  %v371_v0 = vsel %vm35_vm0, %v733_v59, 0.0  ;;  %v295_v28 = vmax.f32 %v294_v23, 0.0  ;;  %v884_v31 = vsub.s32 %v845_v21, %v821_v9 }
  0xa3   :  { %v402_v60 = vsel %vm35_vm0, %v398_v58, 0.0  ;;  %v280_v32 = vmul.f32 %v278_v24, %v276_v19  ;;  %v251_v23 = vrot.slane %v244_v18, %v831_v13  ;;  %v672_v24 = vsel %vm32_vm4, 1.0, %v763_v33 }
  0xa4   :  { %v735_v62 = vpop.eup %734  ;;  %v150_v25 = vpop.permute.xlu1 %149  ;;  %v300_v53 = vrot.slane %v295_v28, 2  ;;  %v178_v3 = vsel %vm99_vm15, %v672_v24, 0.0  ;;  %vm321_vm5 = vcmp.gt.f32.partialorder %v244_v18, 0.0  ;;  %v764_v30 = vmov 0.1  }
  0xa5   :  { %v51_v63 = vsel %vm35_vm0, %v735_v62, 0.0  ;;  %v737_v1 = vpop.eup %736  ;;  %v283_v49 = vmul.f32 %v281_v37, %v280_v32  ;;  %v253_v4 = vmul.f32 %v251_v23, %v246_v22  ;;  %v407_v32 = vsel %vm356_vm7, 1.0, %v764_v30 }
  0xa6   :  { %v374_v2 = vsel %vm35_vm0, %v737_v1, 0.0  ;;  %v84_v38 = vsel %vm32_vm4, 1.0, %v764_v30  ;;  %vm228_vm8 = vcmask 1024   ;;  %v678_v11 = vsel %vm356_vm7, 1.0, %v763_v33 }
  0xa7   :  { %v254_v27 = vsel %vm35_vm0, %v253_v4, 0.0 }
  0xb0   :  { %469 = vbcast.lane.b32.xlu1 %v467_v40, 256  ;;  %v297_v40 = vrot.slane %v295_v28, 1 }
  0xb1   :  { %462 = vbcast.lane.b32.xlu0 %v460_v42, 256 }
  0xd0   :  { %77 = vadd.xlane.f32.xlu0 %v76_v52  ;;  %v299_v52 = vmul.f32 %v297_v40, %v295_v28 }
  0xd4   :  { %80 = vadd.xlane.f32.xlu1 %v79_v55  ;;  %400 = vadd.xlane.f32.xlu0 %v399_v56  ;;  %v311_v56 = vrot.slane %v309_v43, 1 }
  0xd8   :  { %403 = vadd.xlane.f32.xlu1 %v402_v60  ;;  %49 = vadd.xlane.f32.xlu0 %v48_v61  ;;  %v302_v60 = vmul.f32 %v300_v53, %v299_v52  ;;  %v303_v61 = vadd.f32 %v291_v50, %v283_v49 }
  0xda   :  { %v304_v1 = vsub.f32 %v303_v61, %v302_v60 }
  0xdc   :  { %52 = vadd.xlane.f32.xlu1 %v51_v63  ;;  %372 = vadd.xlane.f32.xlu0 %v371_v0  ;;  %v313_v63 = vmul.f32 %v311_v56, %v309_v43  ;;  %v314_v0 = vrot.slane %v309_v43, 2  ;;  %738 = vrcp.f32 %v304_v1 }
  0xe0   :  { %375 = vadd.xlane.f32.xlu0 %v374_v2  ;;  %v316_v2 = vmul.f32 %v314_v0, %v313_v63 }
  0xe2   :  { %740 = vrcp.f32 %v316_v2  ;;  %v317_v8 = vsub.f32 %v316_v2, %v304_v1  ;;  %v933_v2 = vld [vmem:[%s1009_s4 + $0x8] sm:$0xff] }
  0xe6   :  { %v739_v7 = vpop.eup %738 }
  0xe7   :  { %v306_v19 = vmul.f32 %v739_v7, %v302_v60 }
  0xec   :  { %v741_v10 = vpop.eup %740 }
 0x124   :  { %v131_v26 = vpop.xlane.xlu0 %130 }
 0x125   :  { %vm205_vm9 = vcmp.ne.f32.partialorder %v131_v26, 7.0  ;;  %vm153_vm10 = vcmp.eq.f32.partialorder %v131_v26, %v143_v20  ;;  %v319_v20 = vmul.f32 %v741_v10, %v317_v8 }
 0x126   :  { %v675_v34 = vsel %vm205_vm9, 1.0, %v763_v33  ;;  %v673_v41 = vsel %vm153_vm10, 1.0, %v763_v33  ;;  %vm335_vm10 = vcmp.eq.s32.totalorder %v845_v21, 0 }
 0x127   :  { %v216_v44 = vrot.slane %v675_v34, %v884_v31  ;;  %v432_v34 = vsel %vm99_vm15, %v407_v32, 0.0 }
 0x128   :  { %v134_v35 = vpop.xlane.xlu1 %133  ;;  %v451_v36 = vpop.xlane.xlu0 %450 }
 0x129   :  { %vm154_vm12 = vcmp.eq.f32.partialorder %v134_v35, %v150_v25  ;;  %vm206_vm13 = vcmp.ne.f32.partialorder %v134_v35, 7.0  ;;  %vm525_vm14 = vcmp.ne.f32.partialorder %v451_v36, 7.0  ;;  %v320_v25 = vsub.f32 %v306_v19, %v319_v20 }
 0x12a   :  { %v674_v9 = vsel %vm154_vm12, 1.0, %v763_v33  ;;  %v676_v42 = vsel %vm206_vm13, 1.0, %v763_v33  ;;  %v681_v47 = vsel %vm525_vm14, 1.0, %v763_v33  ;;  %vm343_vm12 = vcmp.eq.s32.totalorder %v845_v21, 3 }
 0x12b   :  { %v220_v45 = vrot.slane %v676_v42, %v884_v31  ;;  %v719_v46 = vpack.i.bf16 %v674_v9, %v673_v41  ;;  %v536_v57 = vrot.slane %v681_v47, %v884_v31  ;;  %v322_v26 = vsub.f32 1.0, %v320_v25 }
 0x12c   :  { %v454_v48 = vpop.xlane.xlu1 %453  ;;  %v463_v6 = vpop.permute.xlu0 %462  ;;  %v111_v41 = vsel %vm99_vm15, %v84_v38, 0.0  ;;  %vm347_vm13 = vcmp.eq.s32.totalorder %v845_v21, 4 }
 0x12d   :  { %vm526_vm1 = vcmp.ne.f32.partialorder %v454_v48, 7.0  ;;  %720 = vperm.xlu1 %718, %v719_v46   ;;  %v221_v51 = vsel %vm95_vm11, %v220_v45, %v216_v44  ;;  %vm473_vm3 = vcmp.eq.f32.partialorder %v451_v36, %v463_v6  ;;  %v323_v28 = vsel %vm321_vm5, %v322_v26, 0.0 }
 0x12e   :  { %v682_v54 = vsel %vm526_vm1, 1.0, %v763_v33  ;;  %v223_v55 = vsel %vm99_vm15, %v221_v51, 0.0  ;;  %v679_v15 = vsel %vm473_vm3, 1.0, %v763_v33  ;;  %v325_v29 = vsel %vm324_vm6, %v323_v28, 0.0 }
 0x12f   :  { %v540_v58 = vrot.slane %v682_v54, %v884_v31  ;;  %224 = vadd.xlane.f32.xlu0 %v223_v55  ;;  %v585_v6 = vmul.f32 0.5, %v933_v2 }
 0x130   :  { %v470_v5 = vpop.permute.xlu1 %469 }
 0x131   :  { %v541_v59 = vsel %vm95_vm11, %v540_v58, %v536_v57  ;;  %vm474_vm2 = vcmp.eq.f32.partialorder %v454_v48, %v470_v5  ;;  %v938_v5 = vld [vmem:[%s1010_s5 + $0x8] sm:$0xff]  ;;  %v587_v8 = vrot.slane %v585_v6, 3  ;;  %v498_v6 = vsel %vm99_vm15, %v678_v11, 0.0 }
 0x132   :  { %v543_v62 = vsel %vm99_vm15, %v541_v59, 0.0  ;;  %v680_v12 = vsel %vm474_vm2, 1.0, %v763_v33  ;;  %v591_v7 = vmul.f32 0.5, %v938_v5 }
 0x133   :  { %544 = vadd.xlane.f32.xlu0 %v543_v62  ;;  %v725_v17 = vpack.i.bf16 %v680_v12, %v679_v15  ;;  %v589_v12 = vsub.f32 %v933_v2, %v587_v8  ;;  %v590_v15 = vadd.f32 %v933_v2, %v587_v8  ;;  %v566_v8 = vsub.f32 %v933_v2, %v938_v5 }
 0x134   :  { %v593_v10 = vrot.slane %v591_v7, 3  ;;  %v685_v7 = vld [vmem:[%s1011_s6 + $0x1] sm:$0x1] }
 0x135   :  { %v597_v20 = vsub.f32 %v590_v15, %v589_v12  ;;  %vm642_vm9 = vcmp.gt.f32.partialorder %v685_v7, 0.0  ;;  %v567_v33 = vand.u32 2147483647, %v566_v8 }
 0x136   :  { %v595_v16 = vsub.f32 %v938_v5, %v593_v10 }
 0x137   :  { %v599_v24 = vrot.slane %v597_v20, 1  ;;  %v602_v28 = vrot.slane %v597_v20, 2 }
 0x138   :  { %v614_v19 = vmax.f32 %v589_v12, %v595_v16  ;;  %v629_v26 = vmin.f32 %v589_v12, %v595_v16 }
 0x149   :  { %726 = vperm.xlu0 %724, %v725_v17   ;;  %v596_v17 = vadd.f32 %v938_v5, %v593_v10 }
 0x14b   :  { %v613_v18 = vmin.f32 %v590_v15, %v596_v17  ;;  %v605_v22 = vsub.f32 %v596_v17, %v595_v16  ;;  %v628_v4 = vmax.f32 %v590_v15, %v596_v17 }
 0x14d   :  { %v615_v23 = vsub.f32 %v613_v18, %v614_v19  ;;  %v607_v25 = vrot.slane %v605_v22, 1  ;;  %v610_v30 = vrot.slane %v605_v22, 2 }
 0x151   :  { %179 = vadd.xlane.f32.xlu1 %v178_v3  ;;  %v616_v3 = vmax.f32 %v615_v23, 0.0 }
 0x155   :  { %255 = vadd.xlane.f32.xlu1 %v254_v27  ;;  %v601_v27 = vmul.f32 %v599_v24, %v597_v20  ;;  %v572_v20 = vrot.slane %v685_v7, %v831_v13 }
 0x157   :  { %v574_v24 = vmul.f32 %v572_v20, %v567_v33 }
 0x159   :  { %326 = vadd.xlane.f32.xlu1 %v325_v29  ;;  %v609_v29 = vmul.f32 %v607_v25, %v605_v22 }
 0x15d   :  { %v78_v35 = vpop.xlane.xlu0 %77  ;;  %433 = vadd.xlane.f32.xlu1 %v432_v34  ;;  %v630_v34 = vsub.f32 %v628_v4, %v629_v26  ;;  %v575_v4 = vsel %vm35_vm0, %v574_v24, 0.0  ;;  %vm337_vm0 = vcmp.eq.s32.totalorder %v845_v21, 1 }
 0x161   :  { %v81_v36 = vpop.xlane.xlu1 %80  ;;  %v401_v37 = vpop.xlane.xlu0 %400 }
 0x165   :  { %v404_v39 = vpop.xlane.xlu1 %403  ;;  %v50_v40 = vpop.xlane.xlu0 %49 }
 0x166   :  { %742 = vlog2.f32 %v50_v40 }
 0x168   :  { %112 = vadd.xlane.f32.xlu0 %v111_v41 }
 0x169   :  { %v53_v9 = vpop.xlane.xlu1 %52  ;;  %v373_v42 = vpop.xlane.xlu0 %372 }
 0x16a   :  { %744 = vlog2.f32 %v53_v9 }
 0x16b   :  { %746 = vlog2.f32 %v373_v42  ;;  %v635_v42 = vrot.slane %v630_v34, 2 }
 0x16d   :  { %v376_v43 = vpop.xlane.xlu0 %375 }
 0x16e   :  { %748 = vlog2.f32 %v376_v43 }
 0x170   :  { %v743_v44 = vpop.eup %742 }
 0x171   :  { %v55_v45 = vmul.f32 0.6931472, %v743_v44 }
 0x173   :  { %v82_v48 = vsub.f32 %v55_v45, %v78_v35  ;;  %v604_v35 = vmul.f32 %v602_v28, %v601_v27 }
 0x174   :  { %v745_v46 = vpop.eup %744 }
 0x175   :  { %v747_v47 = vpop.eup %746  ;;  %v57_v49 = vmul.f32 0.6931472, %v745_v46  ;;  %v90_v53 = vrot.slane %v82_v48, %v884_v31 }
 0x176   :  { %v378_v50 = vmul.f32 0.6931472, %v747_v47 }
 0x177   :  { %v83_v51 = vsub.f32 %v57_v49, %v81_v36  ;;  %v612_v36 = vmul.f32 %v610_v30, %v609_v29 }
 0x178   :  { %v749_v52 = vpop.eup %748  ;;  %v405_v55 = vsub.f32 %v378_v50, %v401_v37 }
 0x179   :  { %v94_v54 = vrot.slane %v83_v51, %v884_v31  ;;  %v380_v56 = vmul.f32 0.6931472, %v749_v52  ;;  %v624_v41 = vadd.f32 %v612_v36, %v604_v35 }
 0x17a   :  { %v413_v60 = vrot.slane %v405_v55, %v884_v31 }
 0x17b   :  { %v406_v57 = vsub.f32 %v380_v56, %v404_v39  ;;  %v96_v58 = vsel %vm95_vm11, %v94_v54, %v90_v53  ;;  %v632_v39 = vrot.slane %v630_v34, 1  ;;  %v28_v56 = vld [vmem:[%s1012_s3] sm:$0x3] }
 0x17c   :  { %v98_v59 = vmul.f32 %v96_v58, %v84_v38  ;;  %v621_v38 = vrot.slane %v616_v3, 2 }
 0x17d   :  { %v417_v61 = vrot.slane %v406_v57, %v884_v31  ;;  %v634_v9 = vmul.f32 %v632_v39, %v630_v34 }
 0x17e   :  { %v100_v62 = vsel %vm99_vm15, %v98_v59, 0.0 }
 0x17f   :  { %101 = vadd.xlane.f32.xlu1 %v100_v62  ;;  %v418_v63 = vsel %vm95_vm11, %v417_v61, %v413_v60  ;;  %v637_v44 = vmul.f32 %v635_v42, %v634_v9 }
 0x180   :  { %v420_v0 = vmul.f32 %v418_v63, %v407_v32  ;;  %v618_v32 = vrot.slane %v616_v3, 1 }
 0x182   :  { %v421_v1 = vsel %vm99_vm15, %v420_v0, 0.0  ;;  %v620_v37 = vmul.f32 %v618_v32, %v616_v3 }
 0x183   :  { %422 = vadd.xlane.f32.xlu1 %v421_v1 }
 0x184   :  { %v623_v40 = vmul.f32 %v621_v38, %v620_v37 }
 0x186   :  { %v625_v43 = vsub.f32 %v624_v41, %v623_v40 }
 0x188   :  { %750 = vrcp.f32 %v625_v43  ;;  %v638_v54 = vsub.f32 %v637_v44, %v625_v43 }
 0x189   :  { %752 = vrcp.f32 %v637_v44 }
 0x192   :  { %v751_v53 = vpop.eup %750 }
 0x193   :  { %v753_v55 = vpop.eup %752  ;;  %v627_v58 = vmul.f32 %v751_v53, %v623_v40 }
 0x194   :  { %v640_v59 = vmul.f32 %v753_v55, %v638_v54 }
 0x196   :  { %v641_v63 = vsub.f32 %v627_v58, %v640_v59 }
 0x198   :  { %v643_v10 = vsub.f32 1.0, %v641_v63 }
 0x19a   :  { %v644_v16 = vsel %vm642_vm9, %v643_v10, 0.0 }
 0x19b   :  { %v645_v2 = vsel %vm324_vm6, %v644_v16, 0.0 }
 0x1ac   :  { %v721_v45 = vpop.permute.xlu1 %720 }
 0x1ad   :  { %v723_v46 = vunpack.i.h.bf16 %v721_v45  ;;  %v722_v47 = vunpack.i.l.bf16 %v721_v45 }
 0x1af   :  { %v174_v48 = vrot.slane %v723_v46, %v884_v31  ;;  %v170_v49 = vrot.slane %v722_v47, %v884_v31 }
 0x1b1   :  { %v175_v50 = vsel %vm95_vm11, %v174_v48, %v170_v49 }
 0x1b2   :  { %v177_v51 = vsel %vm32_vm4, %v175_v50, 0.0 }
 0x1b3   :  { %v189_v52 = vsel %vm99_vm15, %v177_v51, 0.0 }
 0x1b4   :  { %190 = vadd.xlane.f32.xlu1 %v189_v52 }
 0x1bc   :  { %v225_v57 = vpop.xlane.xlu0 %224 }
 0x1bd   :  { %v226_v60 = vsub.f32 %v225_v57, %v28_v56 }
 0x1bf   :  { %v227_v61 = vand.u32 2147483647, %v226_v60 }
 0x1c0   :  { %v545_v62 = vpop.xlane.xlu0 %544 }
 0x1c1   :  { %v546_v0 = vsub.f32 %v545_v62, %v28_v56  ;;  %v229_v1 = vsel %vm228_vm8, %v227_v61, 0.0 }
 0x1c2   :  { %230 = vadd.xlane.f32.xlu1 %v229_v1 }
 0x1c3   :  { %v547_v12 = vand.u32 2147483647, %v546_v0 }
 0x1c5   :  { %v548_v19 = vsel %vm228_vm8, %v547_v12, 0.0 }
 0x1c6   :  { %499 = vadd.xlane.f32.xlu1 %v498_v6 }
 0x1c8   :  { %v727_v15 = vpop.permute.xlu0 %726 }
 0x1c9   :  { %v729_v17 = vunpack.i.h.bf16 %v727_v15  ;;  %v728_v18 = vunpack.i.l.bf16 %v727_v15 }
 0x1ca   :  { %549 = vadd.xlane.f32.xlu1 %v548_v19 }
 0x1cb   :  { %v494_v22 = vrot.slane %v729_v17, %v884_v31  ;;  %v490_v23 = vrot.slane %v728_v18, %v884_v31 }
 0x1cd   :  { %v495_v5 = vsel %vm95_vm11, %v494_v22, %v490_v23  ;;  %vm340_vm11 = vcmp.eq.s32.totalorder %v845_v21, 2 }
 0x1ce   :  { %v497_v25 = vsel %vm356_vm7, %v495_v5, 0.0  ;;  %646 = vadd.xlane.f32.xlu1 %v645_v2 }
 0x1cf   :  { %v509_v3 = vsel %vm99_vm15, %v497_v25, 0.0 }
 0x1d0   :  { %510 = vadd.xlane.f32.xlu0 %v509_v3 }
 0x1d4   :  { %576 = vadd.xlane.f32.xlu0 %v575_v4 }
 0x1de   :  { %v180_v13 = vpop.xlane.xlu1 %179 }
 0x1df   :  { %v181_v29 = vrot.slane %v180_v13, 4 }
 0x1e1   :  { %v182_v34 = vadd.f32 %v181_v29, %v180_v13 }
 0x1e2   :  { %v256_v26 = vpop.xlane.xlu1 %255 }
 0x1e3   :  { %v183_v36 = vrot.slane %v182_v34, 2  ;;  %v257_v53 = vrot.slane %v256_v26, 4 }
 0x1e5   :  { %v184_v40 = vadd.f32 %v183_v36, %v182_v34  ;;  %v258_v59 = vadd.f32 %v257_v53, %v256_v26 }
 0x1e6   :  { %v327_v28 = vpop.xlane.xlu1 %326 }
 0x1e7   :  { %v185_v43 = vrot.slane %v184_v40, 1  ;;  %v328_v54 = vrot.slane %v327_v28, 4  ;;  %v259_v63 = vrot.slane %v258_v59, 2 }
 0x1e9   :  { %v186_v47 = vadd.f32 %v185_v43, %v184_v40  ;;  %v329_v60 = vadd.f32 %v328_v54, %v327_v28  ;;  %v260_v15 = vadd.f32 %v259_v63, %v258_v59 }
 0x1ea   :  { %v434_v30 = vpop.xlane.xlu1 %433 }
 0x1eb   :  { %v435_v57 = vrot.slane %v434_v30, 4  ;;  %v330_v1 = vrot.slane %v329_v60, 2  ;;  %v261_v2 = vrot.slane %v260_v15, 1 }
 0x1ed   :  { %v436_v11 = vadd.f32 %v435_v57, %v434_v30  ;;  %v331_v17 = vadd.f32 %v330_v1, %v329_v60 }
 0x1ef   :  { %v437_v8 = vrot.slane %v436_v11, 2  ;;  %v332_v3 = vrot.slane %v331_v17, 1 }
 0x1f1   :  { %v438_v22 = vadd.f32 %v437_v8, %v436_v11  ;;  %v333_v30 = vadd.f32 %v332_v3, %v331_v17 }
 0x1f5   :  { %v113_v27 = vpop.xlane.xlu0 %112 }
 0x1f6   :  { %v114_v31 = vrot.slane %v113_v27, 4 }
 0x1f8   :  { %v115_v32 = vadd.f32 %v114_v31, %v113_v27  ;;  %v439_v27 = vrot.slane %v438_v22, 1  ;;  %v262_v31 = vadd.f32 %v261_v2, %v260_v15 }
 0x1fa   :  { %v116_v35 = vrot.slane %v115_v32, 2 }
 0x1fc   :  { %v117_v38 = vadd.f32 %v116_v35, %v115_v32 }
 0x1fe   :  { %v118_v9 = vrot.slane %v117_v38, 1 }
 0x200   :  { %v119_v45 = vadd.f32 %v118_v9, %v117_v38 }
 0x20c   :  { %v102_v14 = vpop.xlane.xlu1 %101 }
 0x20d   :  { %v103_v37 = vrot.slane %v102_v14, 4 }
 0x20f   :  { %v104_v39 = vadd.f32 %v103_v37, %v102_v14  ;;  %v440_v37 = vadd.f32 %v439_v27, %v438_v22 }
 0x210   :  { %v423_v48 = vpop.xlane.xlu1 %422 }
 0x211   :  { %v105_v41 = vrot.slane %v104_v39, 2  ;;  %v424_v56 = vrot.slane %v423_v48, 4 }
 0x213   :  { %v106_v42 = vadd.f32 %v105_v41, %v104_v39  ;;  %v425_v62 = vadd.f32 %v424_v56, %v423_v48 }
 0x215   :  { %v107_v44 = vrot.slane %v106_v42, 1  ;;  %v426_v7 = vrot.slane %v425_v62, 2 }
 0x217   :  { %v108_v46 = vadd.f32 %v107_v44, %v106_v42  ;;  %v427_v18 = vadd.f32 %v426_v7, %v425_v62 }
 0x219   :  { %687 = vpush %v108_v46  ;;  %v428_v4 = vrot.slane %v427_v18, 1 }
 0x21a   :  { %689 = vpush %v119_v45 }
 0x21b   :  { %691 = vpush %v186_v47  ;;  %v429_v36 = vadd.f32 %v428_v4, %v427_v18 }
 0x241   :  { %v191_v49 = vpop.xlane.xlu1 %190 }
 0x242   :  { %v192_v50 = vrot.slane %v191_v49, 4 }
 0x244   :  { %v193_v51 = vadd.f32 %v192_v50, %v191_v49 }
 0x246   :  { %v194_v52 = vrot.slane %v193_v51, 2 }
 0x248   :  { %v195_v55 = vadd.f32 %v194_v52, %v193_v51 }
 0x24a   :  { %v196_v58 = vrot.slane %v195_v55, 1  ;;  %s688_s6 = spop %687 }
 0x24b   :  { %s690_s21 = spop %689  ;;  %v110_v7 = vstv %s688_s6 }
 0x24c   :  { %v197_v61 = vadd.f32 %v196_v58, %v195_v55  ;;  %s692_s22 = spop %691 }
 0x24d   :  { %v188_v59 = vstv %s692_s22 }
 0x24e   :  { %693 = vpush %v197_v61  ;;  %v201_v60 = vmax.f32 %v188_v59, 1.0  ;;  %v121_v61 = vstv %s690_s21 }
 0x24f   :  { %v231_v0 = vpop.xlane.xlu1 %230 }
 0x250   :  { %v232_v6 = vrot.slane %v231_v0, 4  ;;  %754 = vrcp.f32 %v201_v60 }
 0x251   :  { %756 = vrcp.f32 %v121_v61 }
 0x252   :  { %v233_v10 = vadd.f32 %v232_v6, %v231_v0 }
 0x253   :  { %v500_v12 = vpop.xlane.xlu1 %499 }
 0x254   :  { %v234_v33 = vrot.slane %v233_v10, 2  ;;  %v501_v16 = vrot.slane %v500_v12, 4 }
 0x256   :  { %v502_v19 = vadd.f32 %v501_v16, %v500_v12  ;;  %v235_v20 = vadd.f32 %v234_v33, %v233_v10 }
 0x257   :  { %v550_v23 = vpop.xlane.xlu1 %549 }
 0x258   :  { %v503_v5 = vrot.slane %v502_v19, 2  ;;  %v551_v24 = vrot.slane %v550_v23, 4  ;;  %v236_v25 = vrot.slane %v235_v20, 1 }
 0x25a   :  { %v552_v13 = vadd.f32 %v551_v24, %v550_v23  ;;  %v237_v26 = vadd.f32 %v236_v25, %v235_v20  ;;  %v504_v28 = vadd.f32 %v503_v5, %v502_v19  ;;  %v755_v63 = vpop.eup %754 }
 0x25b   :  { %v647_v29 = vpop.xlane.xlu1 %646  ;;  %v757_v1 = vpop.eup %756 }
 0x25c   :  { %695 = vpush %v237_v26  ;;  %v505_v32 = vrot.slane %v504_v28, 1  ;;  %v648_v34 = vrot.slane %v647_v29, 4  ;;  %v553_v35 = vrot.slane %v552_v13, 2  ;;  %v123_v8 = vmul.f32 %v757_v1, %v110_v7 }
 0x25d   :  { %697 = vpush %v262_v31  ;;  %v511_v14 = vpop.xlane.xlu0 %510 }
 0x25e   :  { %699 = vpush %v333_v30  ;;  %v512_v38 = vrot.slane %v511_v14, 4  ;;  %v506_v39 = vadd.f32 %v505_v32, %v504_v28  ;;  %v649_v40 = vadd.f32 %v648_v34, %v647_v29  ;;  %v554_v43 = vadd.f32 %v553_v35, %v552_v13 }
 0x25f   :  { %701 = vpush %v429_v36  ;;  %v336_v33 = vsel %vm335_vm10, %v123_v8, 0.0 }
 0x260   :  { %703 = vpush %v440_v37  ;;  %v513_v41 = vadd.f32 %v512_v38, %v511_v14  ;;  %v650_v9 = vrot.slane %v649_v40, 2  ;;  %v555_v49 = vrot.slane %v554_v43, 1 }
 0x261   :  { %705 = vpush %v506_v39  ;;  %v577_v42 = vpop.xlane.xlu0 %576 }
 0x262   :  { %v514_v44 = vrot.slane %v513_v41, 2  ;;  %v578_v45 = vrot.slane %v577_v42, 4  ;;  %v651_v46 = vadd.f32 %v650_v9, %v649_v40  ;;  %v556_v55 = vadd.f32 %v555_v49, %v554_v43 }
 0x264   :  { %v579_v47 = vadd.f32 %v578_v45, %v577_v42  ;;  %v515_v48 = vadd.f32 %v514_v44, %v513_v41  ;;  %v652_v52 = vrot.slane %v651_v46, 1 }
 0x266   :  { %v580_v50 = vrot.slane %v579_v47, 2  ;;  %v516_v51 = vrot.slane %v515_v48, 1  ;;  %v653_v57 = vadd.f32 %v652_v52, %v651_v46 }
 0x268   :  { %v581_v53 = vadd.f32 %v580_v50, %v579_v47  ;;  %v517_v54 = vadd.f32 %v516_v51, %v515_v48 }
 0x26a   :  { %707 = vpush %v517_v54  ;;  %v582_v56 = vrot.slane %v581_v53, 1 }
 0x26b   :  { %709 = vpush %v556_v55 }
 0x26c   :  { %v583_v58 = vadd.f32 %v582_v56, %v581_v53 }
 0x26e   :  { %711 = vpush %v583_v58 }
 0x26f   :  { %713 = vpush %v653_v57 }
 0x27f   :  { %s694_s23 = spop %693 }
 0x280   :  { %v199_v62 = vstv %s694_s23 }
 0x281   :  { %v200_v11 = vmul.f32 100.0, %v199_v62 }
 0x283   :  { %v203_v0 = vmul.f32 %v755_v63, %v200_v11 }
 0x285   :  { %v204_v6 = vsub.f32 100.0, %v203_v0 }
 0x287   :  { %v338_v10 = vsel %vm337_vm0, %v204_v6, 0.0 }
 0x288   :  { %v339_v16 = vadd.f32 %v338_v10, %v336_v33 }
 0x28d   :  { %s696_s24 = spop %695 }
 0x28e   :  { %v239_v12 = vstv %s696_s24  ;;  %s698_s25 = spop %697 }
 0x28f   :  { %v241_v15 = vmul.f32 0.5, %v239_v12  ;;  %s700_s26 = spop %699  ;;  %v344_v17 = vstv %s698_s25 }
 0x290   :  { %s702_s27 = spop %701  ;;  %v348_v20 = vstv %s700_s26  ;;  %v345_v23 = vsel %vm343_vm12, %v344_v17, 0.0 }
 0x291   :  { %v341_v18 = vsel %vm340_vm11, %v241_v15, 0.0  ;;  %s704_s28 = spop %703  ;;  %v349_v25 = vsel %vm347_vm13, %v348_v20, 0.0  ;;  %v431_v28 = vstv %s702_s27 }
 0x292   :  { %v342_v19 = vadd.f32 %v341_v18, %v339_v16  ;;  %v442_v22 = vstv %s704_s28  ;;  %s706_s29 = spop %705 }
 0x293   :  { %v508_v2 = vstv %s706_s29  ;;  %758 = vrcp.f32 %v442_v22 }
 0x294   :  { %v346_v5 = vadd.f32 %v345_v23, %v342_v19  ;;  %v521_v24 = vmax.f32 %v508_v2, 1.0 }
 0x296   :  { %v350_v3 = vadd.f32 %v349_v25, %v346_v5  ;;  %760 = vrcp.f32 %v521_v24 }
 0x298   :  { %351 = vst [vmem:[%s1013_s7] sm:$0xff] %v350_v3 }
 0x29b   :  { %s708_s1 = spop %707 }
 0x29c   :  { %v519_v4 = vstv %s708_s1  ;;  %s710_s9 = spop %709 }
 0x29d   :  { %v520_v13 = vmul.f32 100.0, %v519_v4  ;;  %v759_v26 = vpop.eup %758  ;;  %v558_v31 = vstv %s710_s9 }
 0x29e   :  { %v444_v30 = vmul.f32 %v759_v26, %v431_v28  ;;  %v559_v34 = vmul.f32 0.5, %v558_v31 }
 0x29f   :  { %s712_s0 = spop %711 }
 0x2a0   :  { %v761_v27 = vpop.eup %760  ;;  %v655_v36 = vsel %vm335_vm10, %v444_v30, 0.0  ;;  %s714_s10 = spop %713  ;;  %v660_v37 = vstv %s712_s0  ;;  %v658_v38 = vsel %vm340_vm11, %v559_v34, 0.0 }
 0x2a1   :  { %v523_v29 = vmul.f32 %v761_v27, %v520_v13  ;;  %v663_v40 = vstv %s714_s10  ;;  %v661_v41 = vsel %vm343_vm12, %v660_v37, 0.0 }
 0x2a2   :  { %v664_v42 = vsel %vm347_vm13, %v663_v40, 0.0 }
 0x2a3   :  { %v524_v32 = vsub.f32 100.0, %v523_v29 }
 0x2a5   :  { %v656_v35 = vsel %vm337_vm0, %v524_v32, 0.0 }
 0x2a6   :  { %v657_v14 = vadd.f32 %v656_v35, %v655_v36 }
 0x2a8   :  { %v659_v39 = vadd.f32 %v658_v38, %v657_v14 }
 0x2aa   :  { %v662_v9 = vadd.f32 %v661_v41, %v659_v39 }
 0x2ac   :  { %v665_v43 = vadd.f32 %v664_v42, %v662_v9 }
 0x2ae   :  { %686 = vst [vmem:[%s1013_s7 + $0x8] sm:$0xff] %v665_v43 }

</bundles_post_ra>
